<compile_context>
chip_gen: v5e
topology: v5e:2x2
jax: 0.10.0
libtpu: 0.0.40
codegen_flags: <defaults>
</compile_context>

<pallas_src>
import numpy as np
import jax
import jax.numpy as jnp
from jax.experimental import pallas as pl
from jax.experimental.pallas import tpu as pltpu


def _round_up(n: int, m: int) -> int:
    return ((n + m - 1) // m) * m


# --------------------------------------------------------------------------
# Kernel
# --------------------------------------------------------------------------
def _make_kernel(n_blocks: int):
    """Fused MLP kernel: matmuls + ReLU only (biases/BN folded into weights)."""

    def kernel(x_ref, we_ref, be_ref, *refs):
        # refs = [w0_0, w1_0, ..., w0_{n-1}, w1_{n-1}, o_ref]
        o_ref = refs[2 * n_blocks]

        # encoder: [tb, d_in](bf16) @ [d_in, dim_p](bf16) -> f32 accumulation
        h = jnp.dot(x_ref[...].astype(jnp.bfloat16), we_ref[...],
                    preferred_element_type=jnp.float32)
        # single f32 bias add; this row also seeds the constant-1 lane that
        # carries all subsequent (folded) biases through the MXU.
        h = h + be_ref[...]

        for b in range(n_blocks):
            # BatchNorm (eval), block biases and the final BN are folded into
            # the augmented weights; Dropout is identity in eval mode.
            z = jnp.dot(h.astype(jnp.bfloat16), refs[2 * b][...],
                        preferred_element_type=jnp.float32)
            z = jnp.maximum(z, 0.0)
            h = jnp.dot(z.astype(jnp.bfloat16), refs[2 * b + 1][...],
                        preferred_element_type=jnp.float32)

        o_ref[...] = h.astype(o_ref.dtype)

    return kernel


# --------------------------------------------------------------------------
# One-time operand preparation (BN folding, bias-into-weight folding, padding)
# --------------------------------------------------------------------------
def _prepare_operands(params, n_blocks: int):
    """Fold BN affines + biases into lane-dense padded bf16 weights.

    A constant-1 lane (index `dim` in the dim_p space, `d_block` in the dblk_p
    space) is threaded through every layer so that biases live in the
    otherwise-zero padded rows of the next weight matrix.
    """
    f32 = jnp.float32
    dim = int(params["we"].shape[1])
    d_block = int(params["blocks"][0]["w0"].shape[1]) if n_blocks > 0 else dim

    # "+1" guarantees a spare padded lane for the constant-1 trick.
    # NOTE: for production dims >= 256 consider 256-multiples (v6e/v7x MXU).
    dim_p = _round_up(dim + 1, 128)
    dblk_p = _round_up(d_block + 1, 128)
    one_h = dim       # constant-1 lane index in "dim" space
    one_z = d_block   # constant-1 lane index in "d_block" space

    # Encoder weight (zero-padded) and bias row; bias row seeds the 1-lane.
    we = jnp.zeros((int(params["we"].shape[0]), dim_p), f32)
    we = we.at[:, :dim].set(params["we"].astype(f32))
    be = jnp.zeros((1, dim_p), f32)
    be = be.at[0, :dim].set(params["be"].reshape(-1).astype(f32))
    be = be.at[0, one_h].set(1.0)

    block_ws = []
    for bi, blk in enumerate(params["blocks"][:n_blocks]):
        s = blk["bn_scale"].reshape(-1).astype(f32)    # [dim]
        sh = blk["bn_shift"].reshape(-1).astype(f32)   # [dim]
        w0 = blk["w0"].astype(f32)                     # [dim, d_block]
        b0 = blk["b0"].reshape(-1).astype(f32)         # [d_block]
        # (h*s + sh) @ w0 + b0 == h @ (s[:,None]*w0) + (sh @ w0 + b0)
        w0f = w0 * s[:, None]
        b0f = sh @ w0 + b0

        w1 = blk["w1"].astype(f32)                     # [d_block, dim]
        b1 = blk["b1"].reshape(-1).astype(f32)         # [dim]
        if bi == n_blocks - 1:
            # final BN: (z @ w1 + b1)*sf + shf == z @ (w1*sf) + (b1*sf + shf)
            sf = params["bnf_scale"].reshape(-1).astype(f32)
            shf = params["bnf_shift"].reshape(-1).astype(f32)
            w1 = w1 * sf[None, :]
            b1 = b1 * sf + shf

        # Augmented w0: bias b0 lives in the constant-1 row; also carry the
        # 1-lane into the d_block space (ReLU preserves the 1).
        w0a = jnp.zeros((dim_p, dblk_p), f32)
        w0a = w0a.at[:dim, :d_block].set(w0f)
        w0a = w0a.at[one_h, :d_block].set(b0f)
        w0a = w0a.at[one_h, one_z].set(1.0)

        # Augmented w1: bias b1 lives in the constant-1 row; carry the 1-lane
        # back into the dim space for the next block.
        w1a = jnp.zeros((dblk_p, dim_p), f32)
        w1a = w1a.at[:d_block, :dim].set(w1)
        w1a = w1a.at[one_z, :dim].set(b1)
        w1a = w1a.at[one_z, one_h].set(1.0)

        block_ws.append(w0a.astype(jnp.bfloat16))
        block_ws.append(w1a.astype(jnp.bfloat16))

    we = we.astype(jnp.bfloat16)
    return we, be, block_ws, dim, dim_p, dblk_p


def _default_grid_steps(batch: int) -> int:
    """One grid step per TensorCore: 2 on v7x (2 TC/chip), else 1."""
    try:
        kind = jax.devices()[0].device_kind.lower()
    except Exception:
        kind = ""
    steps = 2 if "v7" in kind else 1
    if steps > 1 and (batch % steps != 0 or (batch // steps) % 8 != 0):
        steps = 1
    return steps


# --------------------------------------------------------------------------
# Forward builder (prepare once, jitted hot path)
# --------------------------------------------------------------------------
def make_contra_nca_forward(params, *, n_blocks: int, grid_steps=None,
                            out_dtype=jnp.float32):
    """Prepare operands once and return a jitted forward(x) callable."""
    we, be, block_ws, dim, dim_p, dblk_p = _prepare_operands(params, n_blocks)
    operands = (we, be, *block_ws)
    kernel = _make_kernel(n_blocks)
    weight_bytes = sum(int(a.size) * a.dtype.itemsize for a in operands)
    out_itemsize = np.dtype(out_dtype).itemsize

    def _fwd(x, *ops):
        B, d_in = x.shape
        steps = grid_steps if grid_steps is not None else _default_grid_steps(B)

        # Keep double-buffered per-step x/out tiles (plus resident weights)
        # within a v5e-safe VMEM budget; otherwise split the batch further.
        budget = 12 << 20

        def tile_bytes(s):
            tb_ = B // s
            return 2 * tb_ * (d_in * x.dtype.itemsize + dim_p * out_itemsize)

        while (B % steps == 0
               and tile_bytes(steps) + weight_bytes > budget
               and B % (2 * steps) == 0
               and (B // (2 * steps)) % 8 == 0):
            steps *= 2
        if B % steps != 0 or (steps > 1 and (B // steps) % 8 != 0):
            steps = 1
        tb = B // steps

        def const_spec(a):
            # Whole-array block, replicated across the batch grid.
            return pl.BlockSpec(a.shape, lambda i: (0, 0))

        in_specs = [pl.BlockSpec((tb, d_in), lambda i: (i, 0))]
        in_specs += [const_spec(a) for a in ops]
        out_spec = pl.BlockSpec((tb, dim_p), lambda i: (i, 0))

        flops = 2 * B * (d_in * dim_p + n_blocks * 2 * dim_p * dblk_p)
        bytes_accessed = (B * d_in * x.dtype.itemsize + weight_bytes
                          + B * dim_p * out_itemsize)

        # Only raise the scoped-VMEM limit when the footprint needs it.
        vmem_need = tile_bytes(steps) + 2 * weight_bytes + (2 << 20)
        vmem_limit = None if vmem_need <= (16 << 20) else int(min(vmem_need, 64 << 20))

        out = pl.pallas_call(
            kernel,
            out_shape=jax.ShapeDtypeStruct((B, dim_p), out_dtype),
            grid=(steps,),
            in_specs=in_specs,
            out_specs=out_spec,
            compiler_params=pltpu.CompilerParams(
                dimension_semantics=("parallel",),
                vmem_limit_bytes=vmem_limit),
            cost_estimate=pl.CostEstimate(
                flops=flops, transcendentals=0, bytes_accessed=bytes_accessed),
        )(x, *ops)

        # Drop the zero-padded lanes (tiny copy inside the jitted program).
        return out[:, :dim]

    fwd = jax.jit(_fwd)

    def forward(x):
        return fwd(x, *operands)

    return forward


# --------------------------------------------------------------------------
# Synthetic parameters + references for self-checking
# --------------------------------------------------------------------------
def _init_params(key, *, d_in, dim, d_block, n_blocks, eps=1e-5):
    """Deterministic synthetic parameters (no checkpoint load)."""
    keys = list(jax.random.split(key, 8 + 8 * n_blocks))
    kit = iter(keys)

    def nrm(shape, scale=0.05):
        return (scale * jax.random.normal(next(kit), shape)).astype(jnp.float32)

    def bn_affine(d):
        weight = 1.0 + nrm((d,), 0.02)
        bias = nrm((d,), 0.02)
        running_mean = nrm((d,), 0.1)
        running_var = 1.0 + jnp.abs(nrm((d,), 0.1))
        scale = weight / jnp.sqrt(running_var + eps)
        shift = bias - running_mean * scale
        return scale.reshape(1, d), shift.reshape(1, d)

    params = {
        "we": nrm((d_in, dim)),          # encoder weight, [in, out]
        "be": nrm((1, dim)),
        "blocks": [],
    }
    for _ in range(n_blocks):
        s, sh = bn_affine(dim)
        params["blocks"].append({
            "bn_scale": s, "bn_shift": sh,
            "w0": nrm((dim, d_block)), "b0": nrm((1, d_block)),
            "w1": nrm((d_block, dim)), "b1": nrm((1, dim)),
        })
    sf, shf = bn_affine(dim)
    params["bnf_scale"], params["bnf_shift"] = sf, shf
    return params


def _reference_forward(x, params):
    """Plain-JAX f32 reference of the spec's eval-mode forward."""
    h = x @ params["we"] + params["be"]
    for blk in params["blocks"]:
        z = h * blk["bn_scale"] + blk["bn_shift"]
        z = jnp.maximum(z @ blk["w0"] + blk["b0"], 0.0)
        h = z @ blk["w1"] + blk["b1"]
    if params["blocks"]:           # final BN only exists when n_blocks > 0
        h = h * params["bnf_scale"] + params["bnf_shift"]
    return h


def _reference_from_operands(x, we, be, block_ws, n_blocks):
    """Same math as the kernel (folded/padded/bf16 operands), in plain JAX."""
    h = jnp.dot(x.astype(jnp.bfloat16), we,
                preferred_element_type=jnp.float32) + be
    for b in range(n_blocks):
        z = jnp.maximum(jnp.dot(h.astype(jnp.bfloat16), block_ws[2 * b],
                                preferred_element_type=jnp.float32), 0.0)
        h = jnp.dot(z.astype(jnp.bfloat16), block_ws[2 * b + 1],
                    preferred_element_type=jnp.float32)
    return h


if __name__ == "__main__":
    # Tabular shapes consistent with the module.
    B, d_in, dim, d_block, n_blocks = 512, 32, 32, 64, 2

    key = jax.random.PRNGKey(0)
    kx, kp = jax.random.split(key)
    x = jax.random.normal(kx, (B, d_in), dtype=jnp.float32)
    params = _init_params(kp, d_in=d_in, dim=dim, d_block=d_block,
                          n_blocks=n_blocks)

    # Prepare once (BN/bias folding, padding, bf16 cast), then call the
    # jitted forward: per-call work is just the Pallas kernel + one slice.
    forward = make_contra_nca_forward(params, n_blocks=n_blocks)
    out = forward(x)
    out = jax.block_until_ready(out)
    assert out.shape == (B, dim)

    # 1) Exact-math check against a plain-JAX version of the same folded /
    #    padded / bf16-input computation (tight tolerance).
    we, be, bws, dim_, dim_p, dblk_p = _prepare_operands(params, n_blocks)
    ref_same = _reference_from_operands(x, we, be, bws, n_blocks)[:, :dim]
    assert jnp.allclose(out, ref_same, atol=1e-4, rtol=1e-4), \
        "mismatch vs same-math reference"

    # 2) Spec check against the pure-f32 forward (looser tolerance because the
    #    kernel uses bf16 matmul inputs with f32 accumulation).
    ref_spec = _reference_forward(x, params)
    assert jnp.allclose(out, ref_spec, atol=3e-2, rtol=3e-2), \
        "mismatch vs f32 spec reference"

    print("KERNEL_OK")
</pallas_src>

<mosaic_0001>
module attributes {stable_mosaic.version = 11 : i64} {
  func.func @kernel(%arg0: i32, %arg1: memref<512x32xf32, #tpu.memory_space<vmem>>, %arg2: memref<32x128xbf16, #tpu.memory_space<vmem>>, %arg3: memref<1x128xf32, #tpu.memory_space<vmem>>, %arg4: memref<128x128xbf16, #tpu.memory_space<vmem>>, %arg5: memref<128x128xbf16, #tpu.memory_space<vmem>>, %arg6: memref<128x128xbf16, #tpu.memory_space<vmem>>, %arg7: memref<128x128xbf16, #tpu.memory_space<vmem>>, %arg8: memref<512x128xf32, #tpu.memory_space<vmem>>) attributes {dimension_semantics = [#tpu.dimension_semantics<parallel>], iteration_bounds = array<i64: 1>, scalar_prefetch = 0 : i64, scratch_operands = 0 : i64, tpu.core_type = #tpu.core_type<tc>, window_params = [{transform_indices = @transform_0, window_bounds = array<i64: 512, 32>}, {pipeline_mode = #tpu.pipeline_mode<synchronous>, transform_indices = @transform_1, window_bounds = array<i64: 32, 128>}, {pipeline_mode = #tpu.pipeline_mode<synchronous>, transform_indices = @transform_2, window_bounds = array<i64: 1, 128>}, {pipeline_mode = #tpu.pipeline_mode<synchronous>, transform_indices = @transform_3, window_bounds = array<i64: 128, 128>}, {pipeline_mode = #tpu.pipeline_mode<synchronous>, transform_indices = @transform_4, window_bounds = array<i64: 128, 128>}, {pipeline_mode = #tpu.pipeline_mode<synchronous>, transform_indices = @transform_5, window_bounds = array<i64: 128, 128>}, {pipeline_mode = #tpu.pipeline_mode<synchronous>, transform_indices = @transform_6, window_bounds = array<i64: 128, 128>}, {transform_indices = @transform_7, window_bounds = array<i64: 512, 128>}]} {
    %c0 = arith.constant 0 : index
    %c0_0 = arith.constant 0 : index
    %0 = vector.load %arg1[%c0, %c0_0] : memref<512x32xf32, #tpu.memory_space<vmem>>, vector<512x32xf32>
    %1 = arith.truncf %0 : vector<512x32xf32> to vector<512x32xbf16>
    %c0_1 = arith.constant 0 : index
    %c0_2 = arith.constant 0 : index
    %2 = vector.load %arg2[%c0_1, %c0_2] : memref<32x128xbf16, #tpu.memory_space<vmem>>, vector<32x128xbf16>
    %cst = arith.constant dense<0.000000e+00> : vector<512x128xf32>
    %3 = tpu.matmul %1, %2, %cst {dimension_numbers = #tpu.dot_dimension_numbers<[1], [0], [0], [1], [0, 0, 1, 1], [], []>} : vector<512x32xbf16>, vector<32x128xbf16>, vector<512x128xf32> -> vector<512x128xf32>
    %c0_3 = arith.constant 0 : index
    %c0_4 = arith.constant 0 : index
    %4 = vector.load %arg3[%c0_3, %c0_4] : memref<1x128xf32, #tpu.memory_space<vmem>>, vector<1x128xf32>
    %5 = vector.broadcast %4 : vector<1x128xf32> to vector<512x128xf32>
    %6 = arith.addf %3, %5 : vector<512x128xf32>
    %7 = arith.truncf %6 : vector<512x128xf32> to vector<512x128xbf16>
    %c0_5 = arith.constant 0 : index
    %c0_6 = arith.constant 0 : index
    %8 = vector.load %arg4[%c0_5, %c0_6] : memref<128x128xbf16, #tpu.memory_space<vmem>>, vector<128x128xbf16>
    %cst_7 = arith.constant dense<0.000000e+00> : vector<512x128xf32>
    %9 = tpu.matmul %7, %8, %cst_7 {dimension_numbers = #tpu.dot_dimension_numbers<[1], [0], [0], [1], [0, 0, 1, 1], [], []>} : vector<512x128xbf16>, vector<128x128xbf16>, vector<512x128xf32> -> vector<512x128xf32>
    %cst_8 = arith.constant 0.000000e+00 : f32
    %10 = vector.broadcast %cst_8 : f32 to vector<512x128xf32>
    %11 = arith.maximumf %9, %10 : vector<512x128xf32>
    %12 = arith.truncf %11 : vector<512x128xf32> to vector<512x128xbf16>
    %c0_9 = arith.constant 0 : index
    %c0_10 = arith.constant 0 : index
    %13 = vector.load %arg5[%c0_9, %c0_10] : memref<128x128xbf16, #tpu.memory_space<vmem>>, vector<128x128xbf16>
    %cst_11 = arith.constant dense<0.000000e+00> : vector<512x128xf32>
    %14 = tpu.matmul %12, %13, %cst_11 {dimension_numbers = #tpu.dot_dimension_numbers<[1], [0], [0], [1], [0, 0, 1, 1], [], []>} : vector<512x128xbf16>, vector<128x128xbf16>, vector<512x128xf32> -> vector<512x128xf32>
    %15 = arith.truncf %14 : vector<512x128xf32> to vector<512x128xbf16>
    %c0_12 = arith.constant 0 : index
    %c0_13 = arith.constant 0 : index
    %16 = vector.load %arg6[%c0_12, %c0_13] : memref<128x128xbf16, #tpu.memory_space<vmem>>, vector<128x128xbf16>
    %cst_14 = arith.constant dense<0.000000e+00> : vector<512x128xf32>
    %17 = tpu.matmul %15, %16, %cst_14 {dimension_numbers = #tpu.dot_dimension_numbers<[1], [0], [0], [1], [0, 0, 1, 1], [], []>} : vector<512x128xbf16>, vector<128x128xbf16>, vector<512x128xf32> -> vector<512x128xf32>
    %cst_15 = arith.constant 0.000000e+00 : f32
    %18 = vector.broadcast %cst_15 : f32 to vector<512x128xf32>
    %19 = arith.maximumf %17, %18 : vector<512x128xf32>
    %20 = arith.truncf %19 : vector<512x128xf32> to vector<512x128xbf16>
    %c0_16 = arith.constant 0 : index
    %c0_17 = arith.constant 0 : index
    %21 = vector.load %arg7[%c0_16, %c0_17] : memref<128x128xbf16, #tpu.memory_space<vmem>>, vector<128x128xbf16>
    %cst_18 = arith.constant dense<0.000000e+00> : vector<512x128xf32>
    %22 = tpu.matmul %20, %21, %cst_18 {dimension_numbers = #tpu.dot_dimension_numbers<[1], [0], [0], [1], [0, 0, 1, 1], [], []>} : vector<512x128xbf16>, vector<128x128xbf16>, vector<512x128xf32> -> vector<512x128xf32>
    %c0_19 = arith.constant 0 : index
    %c0_20 = arith.constant 0 : index
    %23 = vector.load %arg8[%c0_19, %c0_20] : memref<512x128xf32, #tpu.memory_space<vmem>>, vector<512x128xf32>
    tpu.vector_store %arg8[%c0_19, %c0_20], %22 {strides = array<i32>} : memref<512x128xf32, #tpu.memory_space<vmem>>, vector<512x128xf32>,
    return
  }
  func.func @transform_0(%arg0: i32) -> (i32, i32) {
    %c0_i32 = arith.constant 0 : i32
    %c0_i32_0 = arith.constant 0 : i32
    return %arg0, %c0_i32 : i32, i32
  }
  func.func @transform_1(%arg0: i32) -> (i32, i32) {
    %c0_i32 = arith.constant 0 : i32
    %c0_i32_0 = arith.constant 0 : i32
    %c0_i32_1 = arith.constant 0 : i32
    return %c0_i32, %c0_i32_0 : i32, i32
  }
  func.func @transform_2(%arg0: i32) -> (i32, i32) {
    %c0_i32 = arith.constant 0 : i32
    %c0_i32_0 = arith.constant 0 : i32
    %c0_i32_1 = arith.constant 0 : i32
    return %c0_i32, %c0_i32_0 : i32, i32
  }
  func.func @transform_3(%arg0: i32) -> (i32, i32) {
    %c0_i32 = arith.constant 0 : i32
    %c0_i32_0 = arith.constant 0 : i32
    %c0_i32_1 = arith.constant 0 : i32
    return %c0_i32, %c0_i32_0 : i32, i32
  }
  func.func @transform_4(%arg0: i32) -> (i32, i32) {
    %c0_i32 = arith.constant 0 : i32
    %c0_i32_0 = arith.constant 0 : i32
    %c0_i32_1 = arith.constant 0 : i32
    return %c0_i32, %c0_i32_0 : i32, i32
  }
  func.func @transform_5(%arg0: i32) -> (i32, i32) {
    %c0_i32 = arith.constant 0 : i32
    %c0_i32_0 = arith.constant 0 : i32
    %c0_i32_1 = arith.constant 0 : i32
    return %c0_i32, %c0_i32_0 : i32, i32
  }
  func.func @transform_6(%arg0: i32) -> (i32, i32) {
    %c0_i32 = arith.constant 0 : i32
    %c0_i32_0 = arith.constant 0 : i32
    %c0_i32_1 = arith.constant 0 : i32
    return %c0_i32, %c0_i32_0 : i32, i32
  }
  func.func @transform_7(%arg0: i32) -> (i32, i32) {
    %c0_i32 = arith.constant 0 : i32
    %c0_i32_0 = arith.constant 0 : i32
    return %arg0, %c0_i32 : i32, i32
  }
}

</mosaic_0001>

<bundles_post_ra>
// kernel: _fwd.1
= control target key start
LH: loop header
LB: loop body
LE: loop exit
PB: predicated region body
PF: predicated region fallthrough
CT: control target
= control target key end

     0   :  { %vm143_vm0 = vcmask 261120   ;;  %s2676_s1 = inlined_call_operand.vmem [shape: bf16[32,128], index: 1, kind: input, shape index: {}]   ;;  %s2677_s0 = inlined_call_operand.vmem [shape: f32[512,32], index: 0, kind: input, shape index: {}]   ;;  %s2678_s3 = inlined_call_operand.vmem [shape: bf16[128,128], index: 3, kind: input, shape index: {}]   ;;  %s2679_s2 = inlined_call_operand.vmem [shape: f32[1,128], index: 2, kind: input, shape index: {}]   ;;  %s2680_s4 = inlined_call_operand.vmem [shape: bf16[128,128], index: 4, kind: input, shape index: {}]   ;;  %s2681_s5 = inlined_call_operand.vmem [shape: bf16[128,128], index: 5, kind: input, shape index: {}]   ;;  %s2682_s6 = inlined_call_operand.vmem [shape: bf16[128,128], index: 6, kind: input, shape index: {}]   ;;  %s2683_s7 = inlined_call_operand.vmem [shape: f32[512,128], index: 7, kind: output, shape index: {}]  }
   0x1   :  { %v1834_v0 = vld [vmem:[%s2676_s1 + $0x8] sm:$0xff]  ;;  %v1833_v1 = vld [vmem:[%s2676_s1] sm:$0xff]  ;;  %v45_v4 = vld [vmem:[%s2677_s0 + $0x90] sm:$0xff] }
   0x2   :  { %v27_v2 = vld [vmem:[%s2677_s0] sm:$0xff]  ;;  %246 = vmatpush.bf16.msra.mxu0 %v1834_v0  ;;  %1867 = vmatpush.bf16.msra.mxu1 %v1834_v0  ;;  %v28_v3 = vld [vmem:[%s2677_s0 + $0x8] sm:$0xff]  ;;  %v46_v5 = vld [vmem:[%s2677_s0 + $0x98] sm:$0xff] }
   0x3   :  { %v1842_v6 = vld [vmem:[%s2678_s3 + $0x38] sm:$0xff]  ;;  %1868 = vmatpush.bf16.msra.mxu2 %v1834_v0  ;;  %1869 = vmatpush.bf16.msra.mxu3 %v1834_v0  ;;  %v91_v7 = vpack.c.bf16 %v28_v3, %v27_v2  ;;  %v100_v8 = vpack.c.bf16 %v46_v5, %v45_v4  ;;  %v1841_v9 = vld [vmem:[%s2678_s3 + $0x30] sm:$0xff]  ;;  %v1840_v10 = vld [vmem:[%s2678_s3 + $0x28] sm:$0xff] }
   0x4   :  { %v29_v11 = vld [vmem:[%s2677_s0 + $0x10] sm:$0xff]  ;;  %v30_v12 = vld [vmem:[%s2677_s0 + $0x18] sm:$0xff]  ;;  %v47_v13 = vld [vmem:[%s2677_s0 + $0xa0] sm:$0xff] }
   0x5   :  { %v48_v14 = vld [vmem:[%s2677_s0 + $0xa8] sm:$0xff]  ;;  %v92_v15 = vpack.c.bf16 %v30_v12, %v29_v11  ;;  %v1839_v17 = vld [vmem:[%s2678_s3 + $0x20] sm:$0xff]  ;;  %v49_v20 = vld [vmem:[%s2677_s0 + $0xb0] sm:$0xff] }
   0x6   :  { %247 = vmatpush.bf16.msra.mxu0 %v1833_v1  ;;  %1870 = vmatpush.bf16.msra.mxu1 %v1833_v1  ;;  %v101_v16 = vpack.c.bf16 %v48_v14, %v47_v13  ;;  %v31_v18 = vld [vmem:[%s2677_s0 + $0x20] sm:$0xff]  ;;  %v32_v19 = vld [vmem:[%s2677_s0 + $0x28] sm:$0xff]  ;;  %v50_v21 = vld [vmem:[%s2677_s0 + $0xb8] sm:$0xff] }
   0x7   :  { %1871 = vmatpush.bf16.msra.mxu2 %v1833_v1  ;;  %1872 = vmatpush.bf16.msra.mxu3 %v1833_v1  ;;  %v93_v22 = vpack.c.bf16 %v32_v19, %v31_v18  ;;  %v102_v23 = vpack.c.bf16 %v50_v21, %v49_v20  ;;  %v1838_v24 = vld [vmem:[%s2678_s3 + $0x18] sm:$0xff]  ;;  %v33_v25 = vld [vmem:[%s2677_s0 + $0x30] sm:$0xff]  ;;  %v51_v27 = vld [vmem:[%s2677_s0 + $0xc0] sm:$0xff] }
   0x8   :  { %v34_v26 = vld [vmem:[%s2677_s0 + $0x38] sm:$0xff]  ;;  %v52_v28 = vld [vmem:[%s2677_s0 + $0xc8] sm:$0xff]  ;;  %v1837_v31 = vld [vmem:[%s2678_s3 + $0x10] sm:$0xff] }
   0x9   :  { %1673 = vmatmul.msk.bf16.vlgmr.msra.gmra.mxu0 %vm143_vm0, %v91_v7  ;;  %1682 = vmatmul.msk.bf16.vlgmr.msra.gmra.mxu1 %vm143_vm0, %v100_v8  ;;  %v94_v29 = vpack.c.bf16 %v34_v26, %v33_v25  ;;  %v103_v30 = vpack.c.bf16 %v52_v28, %v51_v27  ;;  %v35_v32 = vld [vmem:[%s2677_s0 + $0x40] sm:$0xff]  ;;  %v36_v33 = vld [vmem:[%s2677_s0 + $0x48] sm:$0xff]  ;;  %v53_v34 = vld [vmem:[%s2677_s0 + $0xd0] sm:$0xff] }
   0xa   :  { %505 = vmatpush.bf16.msrb.mxu1 %v1842_v6  ;;  %v54_v35 = vld [vmem:[%s2677_s0 + $0xd8] sm:$0xff]  ;;  %v95_v36 = vpack.c.bf16 %v36_v33, %v35_v32  ;;  %v1836_v38 = vld [vmem:[%s2678_s3 + $0x8] sm:$0xff]  ;;  %v37_v39 = vld [vmem:[%s2677_s0 + $0x50] sm:$0xff] }
   0xb   :  { %v104_v37 = vpack.c.bf16 %v54_v35, %v53_v34  ;;  %v38_v40 = vld [vmem:[%s2677_s0 + $0x58] sm:$0xff]  ;;  %v55_v41 = vld [vmem:[%s2677_s0 + $0xe0] sm:$0xff]  ;;  %v56_v42 = vld [vmem:[%s2677_s0 + $0xe8] sm:$0xff] }
   0xc   :  { %v96_v43 = vpack.c.bf16 %v38_v40, %v37_v39  ;;  %v105_v44 = vpack.c.bf16 %v56_v42, %v55_v41  ;;  %v39_v45 = vld [vmem:[%s2677_s0 + $0x60] sm:$0xff]  ;;  %v40_v46 = vld [vmem:[%s2677_s0 + $0x68] sm:$0xff]  ;;  %v57_v47 = vld [vmem:[%s2677_s0 + $0xf0] sm:$0xff] }
   0xd   :  { %v58_v48 = vld [vmem:[%s2677_s0 + $0xf8] sm:$0xff]  ;;  %v97_v49 = vpack.c.bf16 %v40_v46, %v39_v45  ;;  %v1835_v51 = vld [vmem:[%s2678_s3] sm:$0xff]  ;;  %v41_v52 = vld [vmem:[%s2677_s0 + $0x70] sm:$0xff] }
   0xe   :  { %506 = vmatpush.bf16.msrb.mxu1 %v1841_v9  ;;  %v106_v50 = vpack.c.bf16 %v58_v48, %v57_v47  ;;  %v42_v53 = vld [vmem:[%s2677_s0 + $0x78] sm:$0xff]  ;;  %v59_v54 = vld [vmem:[%s2677_s0 + $0x100] sm:$0xff]  ;;  %v60_v55 = vld [vmem:[%s2677_s0 + $0x108] sm:$0xff] }
   0xf   :  { %v98_v56 = vpack.c.bf16 %v42_v53, %v41_v52  ;;  %v107_v57 = vpack.c.bf16 %v60_v55, %v59_v54  ;;  %v63_v58 = vld [vmem:[%s2677_s0 + $0x120] sm:$0xff]  ;;  %v64_v59 = vld [vmem:[%s2677_s0 + $0x128] sm:$0xff]  ;;  %v1850_v62 = vld [vmem:[%s2680_s4 + $0x38] sm:$0xff] }
  0x10   :  { %v109_v60 = vpack.c.bf16 %v64_v59, %v63_v58  ;;  %v43_v61 = vld [vmem:[%s2677_s0 + $0x80] sm:$0xff]  ;;  %v44_v63 = vld [vmem:[%s2677_s0 + $0x88] sm:$0xff]  ;;  %v61_v0 = vld [vmem:[%s2677_s0 + $0x110] sm:$0xff]  ;;  %834 = vmatpush.bf16.msrb.mxu2 %v1850_v62 }
  0x11   :  { %v62_v1 = vld [vmem:[%s2677_s0 + $0x118] sm:$0xff]  ;;  %v99_v2 = vpack.c.bf16 %v44_v63, %v43_v61  ;;  %v65_v6 = vld [vmem:[%s2677_s0 + $0x130] sm:$0xff]  ;;  %v2098_v9 = vld [vmem:[%s2679_s2] ss:$0 sm:$0xff] }
  0x12   :  { %507 = vmatpush.bf16.msrb.mxu1 %v1840_v10  ;;  %1691 = vmatmul.msk.bf16.vlgmr.msra.gmra.mxu2 %vm143_vm0, %v109_v60  ;;  %v108_v3 = vpack.c.bf16 %v62_v1, %v61_v0  ;;  %v66_v7 = vld [vmem:[%s2677_s0 + $0x138] sm:$0xff]  ;;  %v67_v21 = vld [vmem:[%s2677_s0 + $0x140] sm:$0xff]  ;;  %v69_v35 = vld [vmem:[%s2677_s0 + $0x150] sm:$0xff] }
  0x13   :  { %v110_v8 = vpack.c.bf16 %v66_v7, %v65_v6  ;;  %v73_v63 = vld [vmem:[%s2677_s0 + $0x170] sm:$0xff]  ;;  %v74_v0 = vld [vmem:[%s2677_s0 + $0x178] sm:$0xff] }
  0x14   :  { %v114_v1 = vpack.c.bf16 %v74_v0, %v73_v63  ;;  %v1845_v7 = vld [vmem:[%s2680_s4 + $0x10] sm:$0xff] }
  0x16   :  { %508 = vmatpush.bf16.msrb.mxu1 %v1839_v17 }
  0x19   :  { %1674 = vmatmul.msk.bf16.gmra.mxu0 %vm143_vm0, %v92_v15  ;;  %1683 = vmatmul.msk.bf16.gmra.mxu1 %vm143_vm0, %v101_v16  ;;  %v1849_v15 = vld [vmem:[%s2680_s4 + $0x30] sm:$0xff] }
  0x1a   :  { %509 = vmatpush.bf16.msrb.mxu1 %v1838_v24  ;;  %835 = vmatpush.bf16.msrb.mxu2 %v1849_v15 }
  0x1e   :  { %510 = vmatpush.bf16.msrb.mxu1 %v1837_v31 }
  0x22   :  { %511 = vmatpush.bf16.msrb.mxu1 %v1836_v38  ;;  %1692 = vmatmul.msk.bf16.gmra.mxu2 %vm143_vm0, %v110_v8 }
  0x26   :  { %512 = vmatpush.bf16.msrb.mxu1 %v1835_v51 }
  0x29   :  { %1675 = vmatmul.msk.bf16.gmra.mxu0 %vm143_vm0, %v93_v22  ;;  %1684 = vmatmul.msk.bf16.gmra.mxu1 %vm143_vm0, %v102_v23  ;;  %v68_v22 = vld [vmem:[%s2677_s0 + $0x148] sm:$0xff] }
  0x2a   :  { %v111_v23 = vpack.c.bf16 %v68_v22, %v67_v21 }
  0x32   :  { %1693 = vmatmul.msk.bf16.gmra.mxu2 %vm143_vm0, %v111_v23 }
  0x39   :  { %1676 = vmatmul.msk.bf16.gmra.mxu0 %vm143_vm0, %v94_v29  ;;  %1685 = vmatmul.msk.bf16.gmra.mxu1 %vm143_vm0, %v103_v30  ;;  %v1848_v29 = vld [vmem:[%s2680_s4 + $0x28] sm:$0xff] }
  0x3a   :  { %836 = vmatpush.bf16.msrb.mxu2 %v1848_v29 }
  0x49   :  { %1677 = vmatmul.msk.bf16.gmra.mxu0 %vm143_vm0, %v95_v36  ;;  %1686 = vmatmul.msk.bf16.gmra.mxu1 %vm143_vm0, %v104_v37  ;;  %v70_v36 = vld [vmem:[%s2677_s0 + $0x158] sm:$0xff] }
  0x4a   :  { %v112_v37 = vpack.c.bf16 %v70_v36, %v69_v35  ;;  %v78_v35 = vld [vmem:[%s2677_s0 + $0x198] sm:$0xff] }
  0x4c   :  { %1694 = vmatmul.msk.bf16.gmra.mxu2 %vm143_vm0, %v112_v37 }
  0x59   :  { %1678 = vmatmul.msk.bf16.gmra.mxu0 %vm143_vm0, %v96_v43  ;;  %1687 = vmatmul.msk.bf16.gmra.mxu1 %vm143_vm0, %v105_v44  ;;  %v1847_v43 = vld [vmem:[%s2680_s4 + $0x20] sm:$0xff] }
  0x5a   :  { %837 = vmatpush.bf16.msrb.mxu2 %v1847_v43 }
  0x69   :  { %1679 = vmatmul.msk.bf16.gmra.mxu0 %vm143_vm0, %v97_v49  ;;  %1688 = vmatmul.msk.bf16.gmra.mxu1 %vm143_vm0, %v106_v50  ;;  %v71_v49 = vld [vmem:[%s2677_s0 + $0x160] sm:$0xff]  ;;  %v72_v50 = vld [vmem:[%s2677_s0 + $0x168] sm:$0xff] }
  0x6a   :  { %v113_v51 = vpack.c.bf16 %v72_v50, %v71_v49 }
  0x6c   :  { %1695 = vmatmul.msk.bf16.gmra.mxu2 %vm143_vm0, %v113_v51 }
  0x79   :  { %1680 = vmatmul.msk.bf16.gmra.mxu0 %vm143_vm0, %v98_v56  ;;  %1689 = vmatmul.msk.bf16.gmra.mxu1 %vm143_vm0, %v107_v57  ;;  %v1846_v57 = vld [vmem:[%s2680_s4 + $0x18] sm:$0xff] }
  0x7a   :  { %838 = vmatpush.bf16.msrb.mxu2 %v1846_v57 }
  0x7c   :  { %1696 = vmatmul.msk.bf16.gmra.mxu2 %vm143_vm0, %v114_v1 }
  0x7e   :  { %839 = vmatpush.bf16.msrb.mxu2 %v1845_v7 }
  0x86   :  { %v249_v4 = vpop.f32.mrf.mxu0  ;;  %v294_v5 = vpop.f32.mrf.mxu1 }
  0x87   :  { %v2102_v12 = vadd.f32 %v2098_v9, %v294_v5  ;;  %v250_v17 = vadd.f32 %v2098_v9, %v249_v4 }
  0x89   :  { %1681 = vmatmul.msk.bf16.gmra.mxu0 %vm143_vm0, %v99_v2  ;;  %1690 = vmatmul.msk.bf16.gmra.mxu1 %vm143_vm0, %v108_v3 }
  0x8e   :  { %v251_v10 = vpop.f32.mrf.mxu0  ;;  %v296_v11 = vpop.f32.mrf.mxu1 }
  0x8f   :  { %v2105_v13 = vadd.f32 %v2098_v9, %v296_v11  ;;  %v252_v16 = vadd.f32 %v2098_v9, %v251_v10 }
  0x91   :  { %v418_v14 = vpack.c.bf16 %v2105_v13, %v2102_v12  ;;  %v409_v20 = vpack.c.bf16 %v252_v16, %v250_v17  ;;  %v75_v17 = vld [vmem:[%s2677_s0 + $0x180] sm:$0xff]  ;;  %v81_v12 = vld [vmem:[%s2677_s0 + $0x1b0] sm:$0xff]  ;;  %v82_v13 = vld [vmem:[%s2677_s0 + $0x1b8] sm:$0xff] }
  0x95   :  { %v2244_v0 = vpop.f32.mrf.mxu2 }
  0x96   :  { %v254_v18 = vpop.f32.mrf.mxu0  ;;  %v299_v19 = vpop.f32.mrf.mxu1 }
  0x97   :  { %v2122_v26 = vadd.f32 %v2098_v9, %v299_v19  ;;  %v255_v31 = vadd.f32 %v2098_v9, %v254_v18  ;;  %v76_v18 = vld [vmem:[%s2677_s0 + $0x188] sm:$0xff] }
  0x98   :  { %v115_v19 = vpack.c.bf16 %v76_v18, %v75_v17 }
  0x99   :  { %513 = vmatmul.bf16.vlgmr.msrb.gmra.mxu1 %v409_v20 }
  0x9a   :  { %1697 = vmatmul.msk.bf16.gmra.mxu2 %vm143_vm0, %v115_v19 }
  0x9e   :  { %v256_v24 = vpop.f32.mrf.mxu0  ;;  %v301_v25 = vpop.f32.mrf.mxu1 }
  0x9f   :  { %v2125_v27 = vadd.f32 %v2098_v9, %v301_v25  ;;  %v257_v30 = vadd.f32 %v2098_v9, %v256_v24  ;;  %v1844_v25 = vld [vmem:[%s2680_s4 + $0x8] sm:$0xff] }
  0xa0   :  { %840 = vmatpush.bf16.msrb.mxu2 %v1844_v25 }
  0xa1   :  { %v419_v28 = vpack.c.bf16 %v2125_v27, %v2122_v26  ;;  %v410_v34 = vpack.c.bf16 %v257_v30, %v255_v31  ;;  %v83_v26 = vld [vmem:[%s2677_s0 + $0x1c0] sm:$0xff]  ;;  %v84_v27 = vld [vmem:[%s2677_s0 + $0x1c8] sm:$0xff] }
  0xa6   :  { %v259_v32 = vpop.f32.mrf.mxu0  ;;  %v304_v33 = vpop.f32.mrf.mxu1 }
  0xa7   :  { %v2142_v40 = vadd.f32 %v2098_v9, %v304_v33  ;;  %v260_v45 = vadd.f32 %v2098_v9, %v259_v32 }
  0xa9   :  { %518 = vmatmul.bf16.gmra.mxu1 %v410_v34  ;;  %v77_v34 = vld [vmem:[%s2677_s0 + $0x190] sm:$0xff] }
  0xaa   :  { %v116_v36 = vpack.c.bf16 %v78_v35, %v77_v34 }
  0xac   :  { %1698 = vmatmul.msk.bf16.gmra.mxu2 %vm143_vm0, %v116_v36 }
  0xae   :  { %v261_v38 = vpop.f32.mrf.mxu0  ;;  %v306_v39 = vpop.f32.mrf.mxu1 }
  0xaf   :  { %v2145_v41 = vadd.f32 %v2098_v9, %v306_v39  ;;  %v262_v44 = vadd.f32 %v2098_v9, %v261_v38 }
  0xb1   :  { %v420_v42 = vpack.c.bf16 %v2145_v41, %v2142_v40  ;;  %v411_v48 = vpack.c.bf16 %v262_v44, %v260_v45  ;;  %v1843_v45 = vld [vmem:[%s2680_s4] sm:$0xff]  ;;  %v85_v41 = vld [vmem:[%s2677_s0 + $0x1d0] sm:$0xff] }
  0xb2   :  { %841 = vmatpush.bf16.msrb.mxu2 %v1843_v45 }
  0xb6   :  { %v264_v46 = vpop.f32.mrf.mxu0  ;;  %v309_v47 = vpop.f32.mrf.mxu1 }
  0xb7   :  { %v2162_v54 = vadd.f32 %v2098_v9, %v309_v47  ;;  %v265_v59 = vadd.f32 %v2098_v9, %v264_v46 }
  0xb9   :  { %523 = vmatmul.bf16.gmra.mxu1 %v411_v48 }
  0xbe   :  { %v266_v52 = vpop.f32.mrf.mxu0  ;;  %v311_v53 = vpop.f32.mrf.mxu1 }
  0xbf   :  { %v2165_v55 = vadd.f32 %v2098_v9, %v311_v53  ;;  %v267_v58 = vadd.f32 %v2098_v9, %v266_v52 }
  0xc1   :  { %v421_v56 = vpack.c.bf16 %v2165_v55, %v2162_v54  ;;  %v412_v62 = vpack.c.bf16 %v267_v58, %v265_v59  ;;  %v87_v54 = vld [vmem:[%s2677_s0 + $0x1e0] sm:$0xff]  ;;  %v88_v55 = vld [vmem:[%s2677_s0 + $0x1e8] sm:$0xff] }
  0xc6   :  { %v269_v60 = vpop.f32.mrf.mxu0  ;;  %v314_v61 = vpop.f32.mrf.mxu1 }
  0xc7   :  { %v2182_v4 = vadd.f32 %v2098_v9, %v314_v61  ;;  %v270_v10 = vadd.f32 %v2098_v9, %v269_v60 }
  0xc9   :  { %528 = vmatmul.bf16.gmra.mxu1 %v412_v62 }
  0xce   :  { %v271_v2 = vpop.f32.mrf.mxu0  ;;  %v316_v3 = vpop.f32.mrf.mxu1 }
  0xcf   :  { %v2185_v5 = vadd.f32 %v2098_v9, %v316_v3  ;;  %v272_v8 = vadd.f32 %v2098_v9, %v271_v2 }
  0xd1   :  { %v422_v6 = vpack.c.bf16 %v2185_v5, %v2182_v4  ;;  %v413_v16 = vpack.c.bf16 %v272_v8, %v270_v10  ;;  %v2254_v10 = vpop.f32.mrf.mxu2  ;;  %v89_v4 = vld [vmem:[%s2677_s0 + $0x1f0] sm:$0xff]  ;;  %v90_v5 = vld [vmem:[%s2677_s0 + $0x1f8] sm:$0xff] }
  0xd6   :  { %v274_v11 = vpop.f32.mrf.mxu0  ;;  %v319_v15 = vpop.f32.mrf.mxu1 }
  0xd7   :  { %v2202_v22 = vadd.f32 %v2098_v9, %v319_v15  ;;  %v275_v30 = vadd.f32 %v2098_v9, %v274_v11 }
  0xd9   :  { %533 = vmatmul.bf16.gmra.mxu1 %v413_v16  ;;  %v2258_v18 = vpop.f32.mrf.mxu2 }
  0xde   :  { %v276_v20 = vpop.f32.mrf.mxu0  ;;  %v321_v21 = vpop.f32.mrf.mxu1 }
  0xdf   :  { %v2205_v23 = vadd.f32 %v2098_v9, %v321_v21  ;;  %v277_v29 = vadd.f32 %v2098_v9, %v276_v20 }
  0xe1   :  { %v423_v24 = vpack.c.bf16 %v2205_v23, %v2202_v22  ;;  %v414_v33 = vpack.c.bf16 %v277_v29, %v275_v30  ;;  %v2260_v30 = vpop.f32.mrf.mxu2 }
  0xe6   :  { %v279_v31 = vpop.f32.mrf.mxu0  ;;  %v324_v32 = vpop.f32.mrf.mxu1 }
  0xe7   :  { %v2222_v39 = vadd.f32 %v2098_v9, %v324_v32  ;;  %v280_v47 = vadd.f32 %v2098_v9, %v279_v31  ;;  %v79_v31 = vld [vmem:[%s2677_s0 + $0x1a0] sm:$0xff]  ;;  %v80_v32 = vld [vmem:[%s2677_s0 + $0x1a8] sm:$0xff] }
  0xe9   :  { %538 = vmatmul.bf16.gmra.mxu1 %v414_v33  ;;  %v117_v33 = vpack.c.bf16 %v80_v32, %v79_v31 }
  0xeb   :  { %1699 = vmatmul.msk.bf16.vlgmr.msra.gmra.mxu3 %vm143_vm0, %v117_v33  ;;  %v1853_v33 = vld [vmem:[%s2681_s5 + $0x10] sm:$0xff] }
  0xee   :  { %v281_v37 = vpop.f32.mrf.mxu0  ;;  %v326_v38 = vpop.f32.mrf.mxu1 }
  0xef   :  { %v2225_v43 = vadd.f32 %v2098_v9, %v326_v38  ;;  %v282_v46 = vadd.f32 %v2098_v9, %v281_v37  ;;  %v1858_v37 = vld [vmem:[%s2681_s5 + $0x38] sm:$0xff]  ;;  %v2275_v38 = vpop.f32.mrf.mxu2 }
  0xf0   :  { %1099 = vmatpush.bf16.msrb.mxu3 %v1858_v37 }
  0xf1   :  { %v424_v44 = vpack.c.bf16 %v2225_v43, %v2222_v39  ;;  %v415_v50 = vpack.c.bf16 %v282_v46, %v280_v47  ;;  %v1857_v47 = vld [vmem:[%s2681_s5 + $0x30] sm:$0xff] }
  0xf4   :  { %1100 = vmatpush.bf16.msrb.mxu3 %v1857_v47 }
  0xf6   :  { %v284_v48 = vpop.f32.mrf.mxu0  ;;  %v329_v49 = vpop.f32.mrf.mxu1 }
  0xf7   :  { %v2235_v53 = vadd.f32 %v2098_v9, %v329_v49  ;;  %v285_v60 = vadd.f32 %v2098_v9, %v284_v48  ;;  %v2290_v48 = vpop.f32.mrf.mxu2 }
  0xf9   :  { %543 = vmatmul.bf16.gmra.mxu1 %v415_v50 }
  0xfe   :  { %v286_v51 = vpop.f32.mrf.mxu0  ;;  %v331_v52 = vpop.f32.mrf.mxu1 }
  0xff   :  { %v2238_v57 = vadd.f32 %v2098_v9, %v331_v52  ;;  %v287_v59 = vadd.f32 %v2098_v9, %v286_v51 }
 0x101   :  { %v425_v58 = vpack.c.bf16 %v2238_v57, %v2235_v53  ;;  %v416_v63 = vpack.c.bf16 %v287_v59, %v285_v60  ;;  %v2292_v59 = vpop.f32.mrf.mxu2 }
 0x106   :  { %v289_v61 = vpop.f32.mrf.mxu0  ;;  %v334_v62 = vpop.f32.mrf.mxu1 }
 0x107   :  { %v2247_v2 = vadd.f32 %v2098_v9, %v334_v62  ;;  %v290_v15 = vadd.f32 %v2098_v9, %v289_v61  ;;  %v1856_v61 = vld [vmem:[%s2681_s5 + $0x28] sm:$0xff] }
 0x108   :  { %1101 = vmatpush.bf16.msrb.mxu3 %v1856_v61 }
 0x109   :  { %548 = vmatmul.bf16.gmra.mxu1 %v416_v63  ;;  %v2307_v63 = vpop.f32.mrf.mxu2 }
 0x10e   :  { %v336_v1 = vpop.f32.mrf.mxu1  ;;  %v291_v7 = vpop.f32.mrf.mxu0 }
 0x10f   :  { %v2250_v3 = vadd.f32 %v2098_v9, %v336_v1  ;;  %v292_v11 = vadd.f32 %v2098_v9, %v291_v7 }
 0x111   :  { %v426_v8 = vpack.c.bf16 %v2250_v3, %v2247_v2  ;;  %v417_v17 = vpack.c.bf16 %v292_v11, %v290_v15  ;;  %v1855_v15 = vld [vmem:[%s2681_s5 + $0x20] sm:$0xff]  ;;  %v1865_v3 = vld [vmem:[%s2682_s6 + $0x30] sm:$0xff] }
 0x112   :  { %1102 = vmatpush.bf16.msrb.mxu3 %v1855_v15  ;;  %v1866_v15 = vld [vmem:[%s2682_s6 + $0x38] sm:$0xff] }
 0x113   :  { %1428 = vmatpush.bf16.msrb.mxu0 %v1866_v15 }
 0x116   :  { %v514_v16 = vpop.f32.mrf.mxu1 }
 0x117   :  { %v674_v20 = vmax.f32 %v514_v16, 0.0  ;;  %1429 = vmatpush.bf16.msrb.mxu0 %v1865_v3 }
 0x119   :  { %553 = vmatmul.bf16.gmra.mxu1 %v417_v17  ;;  %v2318_v17 = vpop.f32.mrf.mxu2 }
 0x11e   :  { %v516_v19 = vpop.f32.mrf.mxu1 }
 0x11f   :  { %v675_v21 = vmax.f32 %v516_v19, 0.0 }
 0x121   :  { %v738_v25 = vpack.c.bf16 %v675_v21, %v674_v20  ;;  %v2327_v31 = vpop.f32.mrf.mxu2 }
 0x123   :  { %842 = vmatmul.bf16.vlgmr.msrb.gmra.mxu2 %v738_v25 }
 0x126   :  { %v519_v29 = vpop.f32.mrf.mxu1 }
 0x127   :  { %v676_v35 = vmax.f32 %v519_v29, 0.0  ;;  %v1854_v29 = vld [vmem:[%s2681_s5 + $0x18] sm:$0xff] }
 0x128   :  { %1103 = vmatpush.bf16.msrb.mxu3 %v1854_v29 }
 0x129   :  { %558 = vmatmul.bf16.gmra.mxu1 %v418_v14  ;;  %v118_v14 = vpack.c.bf16 %v82_v13, %v81_v12  ;;  %v1852_v13 = vld [vmem:[%s2681_s5 + $0x8] sm:$0xff] }
 0x12b   :  { %1700 = vmatmul.msk.bf16.gmra.mxu3 %vm143_vm0, %v118_v14 }
 0x12c   :  { %1104 = vmatpush.bf16.msrb.mxu3 %v1853_v33 }
 0x12e   :  { %v521_v34 = vpop.f32.mrf.mxu1 }
 0x12f   :  { %v677_v36 = vmax.f32 %v521_v34, 0.0  ;;  %v2342_v34 = vpop.f32.mrf.mxu2 }
 0x130   :  { %1105 = vmatpush.bf16.msrb.mxu3 %v1852_v13 }
 0x131   :  { %v739_v45 = vpack.c.bf16 %v677_v36, %v676_v35 }
 0x133   :  { %847 = vmatmul.bf16.gmra.mxu2 %v739_v45 }
 0x136   :  { %v524_v46 = vpop.f32.mrf.mxu1 }
 0x137   :  { %v678_v50 = vmax.f32 %v524_v46, 0.0  ;;  %v2344_v46 = vpop.f32.mrf.mxu2 }
 0x139   :  { %563 = vmatmul.bf16.gmra.mxu1 %v419_v28  ;;  %v119_v28 = vpack.c.bf16 %v84_v27, %v83_v26 }
 0x13b   :  { %1701 = vmatmul.msk.bf16.gmra.mxu3 %vm143_vm0, %v119_v28 }
 0x13e   :  { %v526_v49 = vpop.f32.mrf.mxu1 }
 0x13f   :  { %v679_v51 = vmax.f32 %v526_v49, 0.0 }
 0x141   :  { %v740_v52 = vpack.c.bf16 %v679_v51, %v678_v50  ;;  %v2359_v50 = vpop.f32.mrf.mxu2 }
 0x143   :  { %852 = vmatmul.bf16.gmra.mxu2 %v740_v52  ;;  %v1851_v52 = vld [vmem:[%s2681_s5] sm:$0xff] }
 0x144   :  { %1106 = vmatpush.bf16.msrb.mxu3 %v1851_v52 }
 0x146   :  { %v529_v60 = vpop.f32.mrf.mxu1 }
 0x147   :  { %v680_v1 = vmax.f32 %v529_v60, 0.0 }
 0x148   :  { %1873 = vmatpush.bf16.msra.mxu3 %v1866_v15 }
 0x149   :  { %568 = vmatmul.bf16.gmra.mxu1 %v420_v42  ;;  %v86_v42 = vld [vmem:[%s2677_s0 + $0x1d8] sm:$0xff]  ;;  %v2367_v23 = vpop.f32.mrf.mxu2 }
 0x14a   :  { %v120_v16 = vpack.c.bf16 %v86_v42, %v85_v41 }
 0x14c   :  { %1702 = vmatmul.msk.bf16.gmra.mxu3 %vm143_vm0, %v120_v16  ;;  %v340_v16 = vadd.f32 %v2098_v9, %v2244_v0 }
 0x14d   :  { %1874 = vmatpush.bf16.msra.mxu3 %v1865_v3 }
 0x14e   :  { %v531_v62 = vpop.f32.mrf.mxu1 }
 0x14f   :  { %v681_v7 = vmax.f32 %v531_v62, 0.0 }
 0x151   :  { %v741_v11 = vpack.c.bf16 %v681_v7, %v680_v1  ;;  %v2369_v28 = vpop.f32.mrf.mxu2 }
 0x153   :  { %857 = vmatmul.bf16.gmra.mxu2 %v741_v11 }
 0x156   :  { %v534_v40 = vpop.f32.mrf.mxu1 }
 0x157   :  { %v682_v20 = vmax.f32 %v534_v40, 0.0 }
 0x159   :  { %573 = vmatmul.bf16.gmra.mxu1 %v421_v56  ;;  %v121_v56 = vpack.c.bf16 %v88_v55, %v87_v54  ;;  %v2374_v62 = vpop.f32.mrf.mxu2 }
 0x15c   :  { %1703 = vmatmul.msk.bf16.gmra.mxu3 %vm143_vm0, %v121_v56  ;;  %v347_v56 = vadd.f32 %v2098_v9, %v2260_v30 }
 0x15e   :  { %v536_v19 = vpop.f32.mrf.mxu1 }
 0x15f   :  { %v683_v21 = vmax.f32 %v536_v19, 0.0  ;;  %v342_v19 = vadd.f32 %v2098_v9, %v2254_v10  ;;  %v345_v10 = vadd.f32 %v2098_v9, %v2258_v18 }
 0x161   :  { %v742_v25 = vpack.c.bf16 %v683_v21, %v682_v20  ;;  %v427_v2 = vpack.c.bf16 %v342_v19, %v340_v16  ;;  %v362_v16 = vadd.f32 %v2098_v9, %v2327_v31  ;;  %v365_v31 = vadd.f32 %v2098_v9, %v2342_v34 }
 0x163   :  { %862 = vmatmul.bf16.gmra.mxu2 %v742_v25 }
 0x166   :  { %v539_v32 = vpop.f32.mrf.mxu1 }
 0x167   :  { %v684_v36 = vmax.f32 %v539_v32, 0.0 }
 0x169   :  { %578 = vmatmul.bf16.gmra.mxu1 %v422_v6  ;;  %v122_v6 = vpack.c.bf16 %v90_v5, %v89_v4 }
 0x16c   :  { %1704 = vmatmul.msk.bf16.gmra.mxu3 %vm143_vm0, %v122_v6 }
 0x16e   :  { %v541_v35 = vpop.f32.mrf.mxu1 }
 0x16f   :  { %v685_v37 = vmax.f32 %v541_v35, 0.0 }
 0x171   :  { %v743_v45 = vpack.c.bf16 %v685_v37, %v684_v36  ;;  %v428_v36 = vpack.c.bf16 %v347_v56, %v345_v10 }
 0x173   :  { %867 = vmatmul.bf16.gmra.mxu2 %v743_v45  ;;  %v1864_v45 = vld [vmem:[%s2682_s6 + $0x28] sm:$0xff] }
 0x174   :  { %1430 = vmatpush.bf16.msrb.mxu0 %v1864_v45  ;;  %1875 = vmatpush.bf16.msra.mxu3 %v1864_v45 }
 0x176   :  { %v544_v12 = vpop.f32.mrf.mxu1 }
 0x177   :  { %v686_v47 = vmax.f32 %v544_v12, 0.0 }
 0x179   :  { %583 = vmatmul.bf16.gmra.mxu1 %v423_v24 }
 0x17e   :  { %v546_v14 = vpop.f32.mrf.mxu1 }
 0x17f   :  { %v687_v49 = vmax.f32 %v546_v14, 0.0  ;;  %v350_v14 = vadd.f32 %v2098_v9, %v2275_v38 }
 0x181   :  { %v744_v51 = vpack.c.bf16 %v687_v49, %v686_v47  ;;  %v352_v47 = vadd.f32 %v2098_v9, %v2290_v48  ;;  %v355_v48 = vadd.f32 %v2098_v9, %v2292_v59  ;;  %v1862_v59 = vld [vmem:[%s2682_s6 + $0x18] sm:$0xff] }
 0x183   :  { %872 = vmatmul.bf16.gmra.mxu2 %v744_v51  ;;  %v429_v52 = vpack.c.bf16 %v352_v47, %v350_v14 }
 0x186   :  { %v549_v22 = vpop.f32.mrf.mxu1 }
 0x187   :  { %v688_v60 = vmax.f32 %v549_v22, 0.0  ;;  %v1863_v22 = vld [vmem:[%s2682_s6 + $0x20] sm:$0xff] }
 0x188   :  { %1431 = vmatpush.bf16.msrb.mxu0 %v1863_v22  ;;  %1876 = vmatpush.bf16.msra.mxu3 %v1863_v22 }
 0x189   :  { %588 = vmatmul.bf16.gmra.mxu1 %v424_v44 }
 0x18c   :  { %1432 = vmatpush.bf16.msrb.mxu0 %v1862_v59  ;;  %1877 = vmatpush.bf16.msra.mxu3 %v1862_v59 }
 0x18e   :  { %v551_v24 = vpop.f32.mrf.mxu1 }
 0x18f   :  { %v689_v26 = vmax.f32 %v551_v24, 0.0 }
 0x191   :  { %v745_v27 = vpack.c.bf16 %v689_v26, %v688_v60 }
 0x193   :  { %877 = vmatmul.bf16.gmra.mxu2 %v745_v27 }
 0x196   :  { %v554_v61 = vpop.f32.mrf.mxu1 }
 0x197   :  { %v690_v7 = vmax.f32 %v554_v61, 0.0 }
 0x199   :  { %593 = vmatmul.bf16.gmra.mxu1 %v425_v58 }
 0x19e   :  { %v556_v1 = vpop.f32.mrf.mxu1 }
 0x19f   :  { %v691_v39 = vmax.f32 %v556_v1, 0.0 }
 0x1a1   :  { %v746_v43 = vpack.c.bf16 %v691_v39, %v690_v7  ;;  %v357_v7 = vadd.f32 %v2098_v9, %v2307_v63  ;;  %v360_v63 = vadd.f32 %v2098_v9, %v2318_v17  ;;  %v1861_v17 = vld [vmem:[%s2682_s6 + $0x10] sm:$0xff] }
 0x1a2   :  { %1433 = vmatpush.bf16.msrb.mxu0 %v1861_v17  ;;  %1878 = vmatpush.bf16.msra.mxu3 %v1861_v17 }
 0x1a3   :  { %882 = vmatmul.bf16.gmra.mxu2 %v746_v43 }
 0x1a6   :  { %v559_v44 = vpop.f32.mrf.mxu1  ;;  %v843_v11 = vpop.f32.mrf.mxu2 }
 0x1a7   :  { %v692_v58 = vmax.f32 %v559_v44, 0.0 }
 0x1a9   :  { %598 = vmatmul.bf16.gmra.mxu1 %v426_v8  ;;  %v2389_v8 = vpop.f32.mrf.mxu3 }
 0x1ae   :  { %v561_v53 = vpop.f32.mrf.mxu1  ;;  %v845_v57 = vpop.f32.mrf.mxu2 }
 0x1af   :  { %v693_v40 = vmax.f32 %v561_v53, 0.0  ;;  %v1003_v41 = vpack.c.bf16 %v845_v57, %v843_v11  ;;  %v430_v11 = vpack.c.bf16 %v357_v7, %v355_v48 }
 0x1b1   :  { %v747_v42 = vpack.c.bf16 %v693_v40, %v692_v58  ;;  %1107 = vmatmul.bf16.vlgmr.msrb.gmra.mxu3 %v1003_v41  ;;  %v2395_v37 = vpop.f32.mrf.mxu3 }
 0x1b3   :  { %887 = vmatmul.bf16.gmra.mxu2 %v747_v42 }
 0x1b6   :  { %v564_v20 = vpop.f32.mrf.mxu1  ;;  %v848_v21 = vpop.f32.mrf.mxu2 }
 0x1b7   :  { %v694_v32 = vmax.f32 %v564_v20, 0.0 }
 0x1b9   :  { %603 = vmatmul.bf16.gmra.mxu1 %v427_v2  ;;  %v2400_v30 = vpop.f32.mrf.mxu3 }
 0x1be   :  { %v566_v25 = vpop.f32.mrf.mxu1  ;;  %v850_v29 = vpop.f32.mrf.mxu2 }
 0x1bf   :  { %v695_v0 = vmax.f32 %v566_v25, 0.0  ;;  %v1004_v54 = vpack.c.bf16 %v850_v29, %v848_v21  ;;  %v431_v21 = vpack.c.bf16 %v362_v16, %v360_v63 }
 0x1c1   :  { %v748_v55 = vpack.c.bf16 %v695_v0, %v694_v32  ;;  %1112 = vmatmul.bf16.gmra.mxu3 %v1004_v54  ;;  %v2409_v24 = vpop.f32.mrf.mxu3 }
 0x1c3   :  { %892 = vmatmul.bf16.gmra.mxu2 %v748_v55  ;;  %v367_v55 = vadd.f32 %v2098_v9, %v2344_v46  ;;  %v370_v46 = vadd.f32 %v2098_v9, %v2359_v50  ;;  %v1859_v50 = vld [vmem:[%s2682_s6] sm:$0xff] }
 0x1c6   :  { %v569_v33 = vpop.f32.mrf.mxu1  ;;  %v853_v35 = vpop.f32.mrf.mxu2 }
 0x1c7   :  { %v696_v5 = vmax.f32 %v569_v33, 0.0 }
 0x1c9   :  { %608 = vmatmul.bf16.gmra.mxu1 %v428_v36  ;;  %v2415_v39 = vpop.f32.mrf.mxu3 }
 0x1ce   :  { %v571_v12 = vpop.f32.mrf.mxu1  ;;  %v855_v4 = vpop.f32.mrf.mxu2 }
 0x1cf   :  { %v697_v18 = vmax.f32 %v571_v12, 0.0  ;;  %v1005_v6 = vpack.c.bf16 %v855_v4, %v853_v35  ;;  %v432_v35 = vpack.c.bf16 %v367_v55, %v365_v31 }
 0x1d1   :  { %v749_v13 = vpack.c.bf16 %v697_v18, %v696_v5  ;;  %1117 = vmatmul.bf16.gmra.mxu3 %v1005_v6  ;;  %v2417_v41 = vpop.f32.mrf.mxu3  ;;  %v372_v6 = vadd.f32 %v2098_v9, %v2367_v23 }
 0x1d3   :  { %897 = vmatmul.bf16.gmra.mxu2 %v749_v13  ;;  %v1860_v13 = vld [vmem:[%s2682_s6 + $0x8] sm:$0xff] }
 0x1d4   :  { %1434 = vmatpush.bf16.msrb.mxu0 %v1860_v13  ;;  %1879 = vmatpush.bf16.msra.mxu3 %v1860_v13 }
 0x1d6   :  { %v574_v49 = vpop.f32.mrf.mxu1  ;;  %v858_v51 = vpop.f32.mrf.mxu2 }
 0x1d7   :  { %v698_v27 = vmax.f32 %v574_v49, 0.0  ;;  %v433_v49 = vpack.c.bf16 %v372_v6, %v370_v46 }
 0x1d8   :  { %1435 = vmatpush.bf16.msrb.mxu0 %v1859_v50  ;;  %1880 = vmatpush.bf16.msra.mxu3 %v1859_v50 }
 0x1d9   :  { %613 = vmatmul.bf16.gmra.mxu1 %v429_v52  ;;  %v2426_v2 = vpop.f32.mrf.mxu3 }
 0x1de   :  { %v576_v60 = vpop.f32.mrf.mxu1  ;;  %v860_v26 = vpop.f32.mrf.mxu2 }
 0x1df   :  { %v699_v38 = vmax.f32 %v576_v60, 0.0  ;;  %v1006_v61 = vpack.c.bf16 %v860_v26, %v858_v51 }
 0x1e1   :  { %v750_v1 = vpack.c.bf16 %v699_v38, %v698_v27  ;;  %1122 = vmatmul.bf16.gmra.mxu3 %v1006_v61  ;;  %v2435_v10 = vpop.f32.mrf.mxu3  ;;  %v375_v61 = vadd.f32 %v2098_v9, %v2369_v28  ;;  %v380_v28 = vadd.f32 %v2098_v9, %v2389_v8  ;;  %v385_v8 = vadd.f32 %v2098_v9, %v2400_v30 }
 0x1e2   :  { %v390_v30 = vadd.f32 %v2098_v9, %v2415_v39  ;;  %v395_v39 = vadd.f32 %v2098_v9, %v2426_v2 }
 0x1e3   :  { %902 = vmatmul.bf16.gmra.mxu2 %v750_v1  ;;  %v377_v1 = vadd.f32 %v2098_v9, %v2374_v62  ;;  %v382_v62 = vadd.f32 %v2098_v9, %v2395_v37  ;;  %v387_v37 = vadd.f32 %v2098_v9, %v2409_v24  ;;  %v392_v24 = vadd.f32 %v2098_v9, %v2417_v41 }
 0x1e4   :  { %v397_v41 = vadd.f32 %v2098_v9, %v2435_v10 }
 0x1e5   :  { %v435_v16 = vpack.c.bf16 %v382_v62, %v380_v28  ;;  %v437_v50 = vpack.c.bf16 %v392_v24, %v390_v30 }
 0x1e6   :  { %v579_v43 = vpop.f32.mrf.mxu1  ;;  %v863_v44 = vpop.f32.mrf.mxu2 }
 0x1e7   :  { %v700_v57 = vmax.f32 %v579_v43, 0.0  ;;  %v434_v43 = vpack.c.bf16 %v377_v1, %v375_v61 }
 0x1e9   :  { %618 = vmatmul.bf16.gmra.mxu1 %v430_v11  ;;  %v2437_v36 = vpop.f32.mrf.mxu3 }
 0x1ea   :  { %v400_v2 = vadd.f32 %v2098_v9, %v2437_v36 }
 0x1ee   :  { %v581_v15 = vpop.f32.mrf.mxu1  ;;  %v865_v53 = vpop.f32.mrf.mxu2 }
 0x1ef   :  { %v701_v58 = vmax.f32 %v581_v15, 0.0  ;;  %v1007_v40 = vpack.c.bf16 %v865_v53, %v863_v44 }
 0x1f1   :  { %v751_v42 = vpack.c.bf16 %v701_v58, %v700_v57  ;;  %1127 = vmatmul.bf16.gmra.mxu3 %v1007_v40  ;;  %v2446_v51 = vpop.f32.mrf.mxu3 }
 0x1f2   :  { %v402_v10 = vadd.f32 %v2098_v9, %v2446_v51  ;;  %v1882_v9 = vld [vmem:[%s2679_s2] ss:$0 sm:$0xff] }
 0x1f3   :  { %907 = vmatmul.bf16.gmra.mxu2 %v751_v42 }
 0x1f6   :  { %v584_v19 = vpop.f32.mrf.mxu1  ;;  %v868_v20 = vpop.f32.mrf.mxu2 }
 0x1f7   :  { %v702_v29 = vmax.f32 %v584_v19, 0.0 }
 0x1f9   :  { %623 = vmatmul.bf16.gmra.mxu1 %v431_v21  ;;  %v2451_v38 = vpop.f32.mrf.mxu3 }
 0x1fa   :  { %v405_v36 = vadd.f32 %v1882_v9, %v2451_v38 }
 0x1fe   :  { %v586_v3 = vpop.f32.mrf.mxu1  ;;  %v870_v25 = vpop.f32.mrf.mxu2 }
 0x1ff   :  { %v703_v32 = vmax.f32 %v586_v3, 0.0  ;;  %v1008_v0 = vpack.c.bf16 %v870_v25, %v868_v20 }
 0x201   :  { %v752_v54 = vpack.c.bf16 %v703_v32, %v702_v29  ;;  %1132 = vmatmul.bf16.gmra.mxu3 %v1008_v0  ;;  %v2457_v44 = vpop.f32.mrf.mxu3 }
 0x202   :  { %v407_v51 = vadd.f32 %v1882_v9, %v2457_v44 }
 0x203   :  { %912 = vmatmul.bf16.gmra.mxu2 %v752_v54 }
 0x206   :  { %v589_v56 = vpop.f32.mrf.mxu1  ;;  %v873_v33 = vpop.f32.mrf.mxu2 }
 0x207   :  { %v704_v4 = vmax.f32 %v589_v56, 0.0 }
 0x209   :  { %628 = vmatmul.bf16.gmra.mxu1 %v432_v35 }
 0x20e   :  { %v591_v45 = vpop.f32.mrf.mxu1  ;;  %v875_v12 = vpop.f32.mrf.mxu2 }
 0x20f   :  { %v705_v5 = vmax.f32 %v591_v45, 0.0  ;;  %v1009_v18 = vpack.c.bf16 %v875_v12, %v873_v33  ;;  %v436_v33 = vpack.c.bf16 %v387_v37, %v385_v8 }
 0x211   :  { %v753_v34 = vpack.c.bf16 %v705_v5, %v704_v4  ;;  %1137 = vmatmul.bf16.gmra.mxu3 %v1009_v18 }
 0x213   :  { %917 = vmatmul.bf16.gmra.mxu2 %v753_v34 }
 0x216   :  { %v594_v14 = vpop.f32.mrf.mxu1  ;;  %v878_v47 = vpop.f32.mrf.mxu2 }
 0x217   :  { %v706_v23 = vmax.f32 %v594_v14, 0.0 }
 0x219   :  { %633 = vmatmul.bf16.gmra.mxu1 %v433_v49 }
 0x21e   :  { %v596_v52 = vpop.f32.mrf.mxu1  ;;  %v880_v22 = vpop.f32.mrf.mxu2 }
 0x21f   :  { %v707_v60 = vmax.f32 %v596_v52, 0.0  ;;  %v1010_v26 = vpack.c.bf16 %v880_v22, %v878_v47 }
 0x221   :  { %v754_v27 = vpack.c.bf16 %v707_v60, %v706_v23  ;;  %1142 = vmatmul.bf16.gmra.mxu3 %v1010_v26 }
 0x223   :  { %922 = vmatmul.bf16.gmra.mxu2 %v754_v27 }
 0x226   :  { %v599_v48 = vpop.f32.mrf.mxu1  ;;  %v883_v7 = vpop.f32.mrf.mxu2 }
 0x227   :  { %v708_v53 = vmax.f32 %v599_v48, 0.0 }
 0x229   :  { %638 = vmatmul.bf16.gmra.mxu1 %v434_v43 }
 0x22e   :  { %v601_v11 = vpop.f32.mrf.mxu1  ;;  %v885_v15 = vpop.f32.mrf.mxu2 }
 0x22f   :  { %v709_v57 = vmax.f32 %v601_v11, 0.0  ;;  %v1011_v58 = vpack.c.bf16 %v885_v15, %v883_v7 }
 0x231   :  { %v755_v40 = vpack.c.bf16 %v709_v57, %v708_v53  ;;  %1147 = vmatmul.bf16.gmra.mxu3 %v1011_v58  ;;  %v438_v53 = vpack.c.bf16 %v397_v41, %v395_v39 }
 0x233   :  { %927 = vmatmul.bf16.gmra.mxu2 %v755_v40 }
 0x234   :  { %v1108_v42 = vpop.f32.mrf.mxu3 }
 0x235   :  { %v1268_v20 = vmax.f32 %v1108_v42, 0.0 }
 0x236   :  { %v604_v59 = vpop.f32.mrf.mxu1  ;;  %v888_v63 = vpop.f32.mrf.mxu2 }
 0x237   :  { %v710_v29 = vmax.f32 %v604_v59, 0.0 }
 0x239   :  { %643 = vmatmul.bf16.gmra.mxu1 %v435_v16 }
 0x23c   :  { %v1110_v19 = vpop.f32.mrf.mxu3 }
 0x23d   :  { %v1269_v21 = vmax.f32 %v1110_v19, 0.0 }
 0x23e   :  { %v606_v3 = vpop.f32.mrf.mxu1  ;;  %v890_v25 = vpop.f32.mrf.mxu2 }
 0x23f   :  { %v1332_v32 = vpack.c.bf16 %v1269_v21, %v1268_v20  ;;  %v711_v0 = vmax.f32 %v606_v3, 0.0  ;;  %v1012_v54 = vpack.c.bf16 %v890_v25, %v888_v63  ;;  %v439_v25 = vpack.c.bf16 %v402_v10, %v400_v2 }
 0x241   :  { %v756_v17 = vpack.c.bf16 %v711_v0, %v710_v29  ;;  %1152 = vmatmul.bf16.gmra.mxu3 %v1012_v54  ;;  %1436 = vmatmul.bf16.vlgmr.msrb.gmra.mxu0 %v1332_v32 }
 0x243   :  { %932 = vmatmul.bf16.gmra.mxu2 %v756_v17 }
 0x244   :  { %v1113_v31 = vpop.f32.mrf.mxu3 }
 0x245   :  { %v1270_v45 = vmax.f32 %v1113_v31, 0.0 }
 0x246   :  { %v609_v55 = vpop.f32.mrf.mxu1  ;;  %v893_v56 = vpop.f32.mrf.mxu2 }
 0x247   :  { %v712_v18 = vmax.f32 %v609_v55, 0.0 }
 0x249   :  { %648 = vmatmul.bf16.gmra.mxu1 %v436_v33 }
 0x24c   :  { %v1115_v35 = vpop.f32.mrf.mxu3 }
 0x24d   :  { %v1271_v12 = vmax.f32 %v1115_v35, 0.0 }
 0x24e   :  { %v611_v4 = vpop.f32.mrf.mxu1  ;;  %v895_v5 = vpop.f32.mrf.mxu2 }
 0x24f   :  { %v713_v34 = vmax.f32 %v611_v4, 0.0  ;;  %v1013_v46 = vpack.c.bf16 %v895_v5, %v893_v56  ;;  %v1333_v6 = vpack.c.bf16 %v1271_v12, %v1270_v45  ;;  %v440_v12 = vpack.c.bf16 %v407_v51, %v405_v36 }
 0x251   :  { %v757_v13 = vpack.c.bf16 %v713_v34, %v712_v18  ;;  %1157 = vmatmul.bf16.gmra.mxu3 %v1013_v46  ;;  %1441 = vmatmul.bf16.gmra.mxu0 %v1333_v6 }
 0x253   :  { %937 = vmatmul.bf16.gmra.mxu2 %v757_v13 }
 0x254   :  { %v1118_v14 = vpop.f32.mrf.mxu3 }
 0x255   :  { %v1272_v22 = vmax.f32 %v1118_v14, 0.0 }
 0x256   :  { %v614_v47 = vpop.f32.mrf.mxu1  ;;  %v898_v49 = vpop.f32.mrf.mxu2 }
 0x257   :  { %v714_v27 = vmax.f32 %v614_v47, 0.0 }
 0x259   :  { %653 = vmatmul.bf16.gmra.mxu1 %v437_v50 }
 0x25c   :  { %v1120_v52 = vpop.f32.mrf.mxu3 }
 0x25d   :  { %v1273_v23 = vmax.f32 %v1120_v52, 0.0 }
 0x25e   :  { %v616_v60 = vpop.f32.mrf.mxu1  ;;  %v900_v26 = vpop.f32.mrf.mxu2 }
 0x25f   :  { %v715_v61 = vmax.f32 %v616_v60, 0.0  ;;  %v1014_v1 = vpack.c.bf16 %v900_v26, %v898_v49  ;;  %v1334_v48 = vpack.c.bf16 %v1273_v23, %v1272_v22 }
 0x261   :  { %v758_v7 = vpack.c.bf16 %v715_v61, %v714_v27  ;;  %1162 = vmatmul.bf16.gmra.mxu3 %v1014_v1  ;;  %1446 = vmatmul.bf16.gmra.mxu0 %v1334_v48 }
 0x263   :  { %942 = vmatmul.bf16.gmra.mxu2 %v758_v7 }
 0x264   :  { %v1123_v43 = vpop.f32.mrf.mxu3 }
 0x265   :  { %v1274_v58 = vmax.f32 %v1123_v43, 0.0 }
 0x266   :  { %v619_v11 = vpop.f32.mrf.mxu1  ;;  %v903_v15 = vpop.f32.mrf.mxu2 }
 0x267   :  { %v716_v42 = vmax.f32 %v619_v11, 0.0 }
 0x269   :  { %658 = vmatmul.bf16.gmra.mxu1 %v438_v53 }
 0x26c   :  { %v1125_v57 = vpop.f32.mrf.mxu3 }
 0x26d   :  { %v1275_v40 = vmax.f32 %v1125_v57, 0.0 }
 0x26e   :  { %v621_v28 = vpop.f32.mrf.mxu1  ;;  %v905_v62 = vpop.f32.mrf.mxu2 }
 0x26f   :  { %v1335_v59 = vpack.c.bf16 %v1275_v40, %v1274_v58  ;;  %v717_v63 = vmax.f32 %v621_v28, 0.0  ;;  %v1015_v16 = vpack.c.bf16 %v905_v62, %v903_v15 }
 0x271   :  { %v759_v19 = vpack.c.bf16 %v717_v63, %v716_v42  ;;  %1167 = vmatmul.bf16.gmra.mxu3 %v1015_v16  ;;  %1451 = vmatmul.bf16.gmra.mxu0 %v1335_v59 }
 0x273   :  { %947 = vmatmul.bf16.gmra.mxu2 %v759_v19 }
 0x274   :  { %v1128_v20 = vpop.f32.mrf.mxu3 }
 0x275   :  { %v1276_v32 = vmax.f32 %v1128_v20, 0.0 }
 0x276   :  { %v624_v21 = vpop.f32.mrf.mxu1  ;;  %v908_v3 = vpop.f32.mrf.mxu2 }
 0x277   :  { %v718_v8 = vmax.f32 %v624_v21, 0.0 }
 0x279   :  { %663 = vmatmul.bf16.gmra.mxu1 %v439_v25 }
 0x27c   :  { %v1130_v29 = vpop.f32.mrf.mxu3 }
 0x27d   :  { %v1277_v0 = vmax.f32 %v1130_v29, 0.0 }
 0x27e   :  { %v626_v54 = vpop.f32.mrf.mxu1  ;;  %v910_v17 = vpop.f32.mrf.mxu2 }
 0x27f   :  { %v1336_v37 = vpack.c.bf16 %v1277_v0, %v1276_v32  ;;  %v719_v31 = vmax.f32 %v626_v54, 0.0  ;;  %v1016_v55 = vpack.c.bf16 %v910_v17, %v908_v3 }
 0x281   :  { %v760_v56 = vpack.c.bf16 %v719_v31, %v718_v8  ;;  %1172 = vmatmul.bf16.gmra.mxu3 %v1016_v55  ;;  %1456 = vmatmul.bf16.gmra.mxu0 %v1336_v37 }
 0x283   :  { %952 = vmatmul.bf16.gmra.mxu2 %v760_v56 }
 0x284   :  { %v1133_v33 = vpop.f32.mrf.mxu3 }
 0x285   :  { %v1278_v5 = vmax.f32 %v1133_v33, 0.0 }
 0x286   :  { %v629_v35 = vpop.f32.mrf.mxu1  ;;  %v913_v45 = vpop.f32.mrf.mxu2 }
 0x287   :  { %v720_v6 = vmax.f32 %v629_v35, 0.0 }
 0x289   :  { %668 = vmatmul.bf16.gmra.mxu1 %v440_v12 }
 0x28c   :  { %v1135_v4 = vpop.f32.mrf.mxu3 }
 0x28d   :  { %v1279_v18 = vmax.f32 %v1135_v4, 0.0 }
 0x28e   :  { %v631_v34 = vpop.f32.mrf.mxu1  ;;  %v915_v46 = vpop.f32.mrf.mxu2 }
 0x28f   :  { %v1337_v13 = vpack.c.bf16 %v1279_v18, %v1278_v5  ;;  %v721_v30 = vmax.f32 %v631_v34, 0.0  ;;  %v1017_v24 = vpack.c.bf16 %v915_v46, %v913_v45 }
 0x291   :  { %v761_v14 = vpack.c.bf16 %v721_v30, %v720_v6  ;;  %1177 = vmatmul.bf16.gmra.mxu3 %v1017_v24  ;;  %1461 = vmatmul.bf16.gmra.mxu0 %v1337_v13 }
 0x293   :  { %957 = vmatmul.bf16.gmra.mxu2 %v761_v14 }
 0x294   :  { %v1138_v38 = vpop.f32.mrf.mxu3 }
 0x295   :  { %v1280_v50 = vmax.f32 %v1138_v38, 0.0 }
 0x296   :  { %v634_v44 = vpop.f32.mrf.mxu1  ;;  %v918_v47 = vpop.f32.mrf.mxu2 }
 0x297   :  { %v722_v60 = vmax.f32 %v634_v44, 0.0 }
 0x29c   :  { %v1140_v49 = vpop.f32.mrf.mxu3 }
 0x29d   :  { %v1281_v52 = vmax.f32 %v1140_v49, 0.0 }
 0x29e   :  { %v636_v22 = vpop.f32.mrf.mxu1  ;;  %v920_v23 = vpop.f32.mrf.mxu2 }
 0x29f   :  { %v1338_v26 = vpack.c.bf16 %v1281_v52, %v1280_v50  ;;  %v723_v27 = vmax.f32 %v636_v22, 0.0  ;;  %v1018_v61 = vpack.c.bf16 %v920_v23, %v918_v47 }
 0x2a1   :  { %v762_v1 = vpack.c.bf16 %v723_v27, %v722_v60  ;;  %1182 = vmatmul.bf16.gmra.mxu3 %v1018_v61  ;;  %1466 = vmatmul.bf16.gmra.mxu0 %v1338_v26 }
 0x2a3   :  { %962 = vmatmul.bf16.gmra.mxu2 %v762_v1 }
 0x2a4   :  { %v1143_v48 = vpop.f32.mrf.mxu3 }
 0x2a5   :  { %v1282_v43 = vmax.f32 %v1143_v48, 0.0 }
 0x2a6   :  { %v639_v7 = vpop.f32.mrf.mxu1  ;;  %v923_v39 = vpop.f32.mrf.mxu2 }
 0x2a7   :  { %v724_v57 = vmax.f32 %v639_v7, 0.0 }
 0x2ac   :  { %v1145_v41 = vpop.f32.mrf.mxu3 }
 0x2ad   :  { %v1283_v11 = vmax.f32 %v1145_v41, 0.0 }
 0x2ae   :  { %v641_v15 = vpop.f32.mrf.mxu1  ;;  %v925_v53 = vpop.f32.mrf.mxu2 }
 0x2af   :  { %v1339_v58 = vpack.c.bf16 %v1283_v11, %v1282_v43  ;;  %v725_v40 = vmax.f32 %v641_v15, 0.0  ;;  %v1019_v28 = vpack.c.bf16 %v925_v53, %v923_v39 }
 0x2b1   :  { %v763_v62 = vpack.c.bf16 %v725_v40, %v724_v57  ;;  %1187 = vmatmul.bf16.gmra.mxu3 %v1019_v28  ;;  %1471 = vmatmul.bf16.gmra.mxu0 %v1339_v58 }
 0x2b3   :  { %967 = vmatmul.bf16.gmra.mxu2 %v763_v62 }
 0x2b4   :  { %v1148_v42 = vpop.f32.mrf.mxu3 }
 0x2b5   :  { %v1284_v19 = vmax.f32 %v1148_v42, 0.0 }
 0x2b6   :  { %v644_v59 = vpop.f32.mrf.mxu1  ;;  %v928_v63 = vpop.f32.mrf.mxu2 }
 0x2b7   :  { %v726_v21 = vmax.f32 %v644_v59, 0.0 }
 0x2bc   :  { %v1150_v16 = vpop.f32.mrf.mxu3 }
 0x2bd   :  { %v1285_v2 = vmax.f32 %v1150_v16, 0.0 }
 0x2be   :  { %v646_v10 = vpop.f32.mrf.mxu1  ;;  %v930_v20 = vpop.f32.mrf.mxu2 }
 0x2bf   :  { %v1340_v3 = vpack.c.bf16 %v1285_v2, %v1284_v19  ;;  %v727_v25 = vmax.f32 %v646_v10, 0.0  ;;  %v1020_v29 = vpack.c.bf16 %v930_v20, %v928_v63  ;;  %v1437_v32 = vpop.f32.mrf.mxu0 }
 0x2c0   :  { %1597 = vst [vmem:[%s2683_s7] sm:$0xff] %v1437_v32 }
 0x2c1   :  { %v764_v0 = vpack.c.bf16 %v727_v25, %v726_v21  ;;  %1192 = vmatmul.bf16.gmra.mxu3 %v1020_v29  ;;  %1476 = vmatmul.bf16.gmra.mxu0 %v1340_v3 }
 0x2c3   :  { %972 = vmatmul.bf16.gmra.mxu2 %v764_v0 }
 0x2c4   :  { %v1153_v54 = vpop.f32.mrf.mxu3 }
 0x2c5   :  { %v1286_v55 = vmax.f32 %v1153_v54, 0.0 }
 0x2c6   :  { %v649_v17 = vpop.f32.mrf.mxu1  ;;  %v933_v8 = vpop.f32.mrf.mxu2 }
 0x2c7   :  { %v1439_v37 = vpop.f32.mrf.mxu0  ;;  %v728_v51 = vmax.f32 %v649_v17, 0.0 }
 0x2c8   :  { %1598 = vst [vmem:[%s2683_s7 + $0x8] sm:$0xff] %v1439_v37 }
 0x2cc   :  { %v1155_v31 = vpop.f32.mrf.mxu3 }
 0x2cd   :  { %v1287_v56 = vmax.f32 %v1155_v31, 0.0 }
 0x2ce   :  { %v651_v9 = vpop.f32.mrf.mxu1  ;;  %v935_v36 = vpop.f32.mrf.mxu2 }
 0x2cf   :  { %v1341_v33 = vpack.c.bf16 %v1287_v56, %v1286_v55  ;;  %v729_v35 = vmax.f32 %v651_v9, 0.0  ;;  %v1021_v45 = vpack.c.bf16 %v935_v36, %v933_v8  ;;  %v1442_v12 = vpop.f32.mrf.mxu0 }
 0x2d0   :  { %1599 = vst [vmem:[%s2683_s7 + $0x10] sm:$0xff] %v1442_v12 }
 0x2d1   :  { %v765_v4 = vpack.c.bf16 %v729_v35, %v728_v51  ;;  %1197 = vmatmul.bf16.gmra.mxu3 %v1021_v45  ;;  %1481 = vmatmul.bf16.gmra.mxu0 %v1341_v33 }
 0x2d3   :  { %977 = vmatmul.bf16.gmra.mxu2 %v765_v4 }
 0x2d4   :  { %v1158_v5 = vpop.f32.mrf.mxu3 }
 0x2d5   :  { %v1288_v13 = vmax.f32 %v1158_v5, 0.0 }
 0x2d6   :  { %v654_v18 = vpop.f32.mrf.mxu1  ;;  %v938_v34 = vpop.f32.mrf.mxu2 }
 0x2d7   :  { %v1444_v46 = vpop.f32.mrf.mxu0  ;;  %v730_v38 = vmax.f32 %v654_v18, 0.0 }
 0x2d8   :  { %1600 = vst [vmem:[%s2683_s7 + $0x18] sm:$0xff] %v1444_v46 }
 0x2dc   :  { %v1160_v6 = vpop.f32.mrf.mxu3 }
 0x2dd   :  { %v1289_v30 = vmax.f32 %v1160_v6, 0.0 }
 0x2de   :  { %v656_v24 = vpop.f32.mrf.mxu1  ;;  %v940_v14 = vpop.f32.mrf.mxu2 }
 0x2df   :  { %v1342_v44 = vpack.c.bf16 %v1289_v30, %v1288_v13  ;;  %v731_v47 = vmax.f32 %v656_v24, 0.0  ;;  %v1022_v49 = vpack.c.bf16 %v940_v14, %v938_v34  ;;  %v1447_v50 = vpop.f32.mrf.mxu0 }
 0x2e0   :  { %1601 = vst [vmem:[%s2683_s7 + $0x20] sm:$0xff] %v1447_v50 }
 0x2e1   :  { %v766_v52 = vpack.c.bf16 %v731_v47, %v730_v38  ;;  %1202 = vmatmul.bf16.gmra.mxu3 %v1022_v49  ;;  %1486 = vmatmul.bf16.gmra.mxu0 %v1342_v44 }
 0x2e3   :  { %982 = vmatmul.bf16.gmra.mxu2 %v766_v52 }
 0x2e4   :  { %v1163_v22 = vpop.f32.mrf.mxu3 }
 0x2e5   :  { %v1290_v61 = vmax.f32 %v1163_v22, 0.0 }
 0x2e6   :  { %v659_v23 = vpop.f32.mrf.mxu1  ;;  %v943_v60 = vpop.f32.mrf.mxu2 }
 0x2e7   :  { %v1449_v26 = vpop.f32.mrf.mxu0  ;;  %v732_v39 = vmax.f32 %v659_v23, 0.0 }
 0x2e8   :  { %1602 = vst [vmem:[%s2683_s7 + $0x28] sm:$0xff] %v1449_v26 }
 0x2ec   :  { %v1165_v27 = vpop.f32.mrf.mxu3 }
 0x2ed   :  { %v1291_v1 = vmax.f32 %v1165_v27, 0.0 }
 0x2ee   :  { %v661_v48 = vpop.f32.mrf.mxu1  ;;  %v945_v7 = vpop.f32.mrf.mxu2 }
 0x2ef   :  { %v1343_v41 = vpack.c.bf16 %v1291_v1, %v1290_v61  ;;  %v733_v43 = vmax.f32 %v661_v48, 0.0  ;;  %v1023_v11 = vpack.c.bf16 %v945_v7, %v943_v60  ;;  %v1452_v15 = vpop.f32.mrf.mxu0 }
 0x2f0   :  { %1603 = vst [vmem:[%s2683_s7 + $0x30] sm:$0xff] %v1452_v15 }
 0x2f1   :  { %v767_v53 = vpack.c.bf16 %v733_v43, %v732_v39  ;;  %1207 = vmatmul.bf16.gmra.mxu3 %v1023_v11  ;;  %1491 = vmatmul.bf16.gmra.mxu0 %v1343_v41 }
 0x2f3   :  { %987 = vmatmul.bf16.gmra.mxu2 %v767_v53 }
 0x2f4   :  { %v1168_v57 = vpop.f32.mrf.mxu3 }
 0x2f5   :  { %v1292_v42 = vmax.f32 %v1168_v57, 0.0 }
 0x2f6   :  { %v664_v58 = vpop.f32.mrf.mxu1  ;;  %v948_v40 = vpop.f32.mrf.mxu2 }
 0x2f7   :  { %v1454_v28 = vpop.f32.mrf.mxu0  ;;  %v734_v19 = vmax.f32 %v664_v58, 0.0 }
 0x2f8   :  { %1604 = vst [vmem:[%s2683_s7 + $0x38] sm:$0xff] %v1454_v28 }
 0x2fc   :  { %v1170_v62 = vpop.f32.mrf.mxu3 }
 0x2fd   :  { %v1293_v59 = vmax.f32 %v1170_v62, 0.0 }
 0x2fe   :  { %v666_v63 = vpop.f32.mrf.mxu1  ;;  %v950_v16 = vpop.f32.mrf.mxu2 }
 0x2ff   :  { %v1344_v2 = vpack.c.bf16 %v1293_v59, %v1292_v42  ;;  %v735_v10 = vmax.f32 %v666_v63, 0.0  ;;  %v1024_v20 = vpack.c.bf16 %v950_v16, %v948_v40  ;;  %v1457_v21 = vpop.f32.mrf.mxu0 }
 0x300   :  { %1605 = vst [vmem:[%s2683_s7 + $0x40] sm:$0xff] %v1457_v21 }
 0x301   :  { %v768_v3 = vpack.c.bf16 %v735_v10, %v734_v19  ;;  %1212 = vmatmul.bf16.gmra.mxu3 %v1024_v20  ;;  %1496 = vmatmul.bf16.gmra.mxu0 %v1344_v2 }
 0x303   :  { %992 = vmatmul.bf16.gmra.mxu2 %v768_v3 }
 0x304   :  { %v1173_v25 = vpop.f32.mrf.mxu3 }
 0x305   :  { %v1294_v17 = vmax.f32 %v1173_v25, 0.0 }
 0x306   :  { %v669_v29 = vpop.f32.mrf.mxu1  ;;  %v953_v32 = vpop.f32.mrf.mxu2 }
 0x307   :  { %v1459_v0 = vpop.f32.mrf.mxu0  ;;  %v736_v55 = vmax.f32 %v669_v29, 0.0 }
 0x308   :  { %1606 = vst [vmem:[%s2683_s7 + $0x48] sm:$0xff] %v1459_v0 }
 0x30c   :  { %v1175_v54 = vpop.f32.mrf.mxu3 }
 0x30d   :  { %v1295_v8 = vmax.f32 %v1175_v54, 0.0 }
 0x30e   :  { %v671_v37 = vpop.f32.mrf.mxu1  ;;  %v955_v31 = vpop.f32.mrf.mxu2 }
 0x30f   :  { %v1345_v56 = vpack.c.bf16 %v1295_v8, %v1294_v17  ;;  %v737_v9 = vmax.f32 %v671_v37, 0.0  ;;  %v1025_v36 = vpack.c.bf16 %v955_v31, %v953_v32  ;;  %v1462_v51 = vpop.f32.mrf.mxu0 }
 0x310   :  { %1607 = vst [vmem:[%s2683_s7 + $0x50] sm:$0xff] %v1462_v51 }
 0x311   :  { %v769_v33 = vpack.c.bf16 %v737_v9, %v736_v55  ;;  %1217 = vmatmul.bf16.gmra.mxu3 %v1025_v36  ;;  %1501 = vmatmul.bf16.gmra.mxu0 %v1345_v56 }
 0x313   :  { %997 = vmatmul.bf16.gmra.mxu2 %v769_v33 }
 0x314   :  { %v1178_v35 = vpop.f32.mrf.mxu3 }
 0x315   :  { %v1296_v5 = vmax.f32 %v1178_v35, 0.0 }
 0x316   :  { %v958_v45 = vpop.f32.mrf.mxu2 }
 0x317   :  { %v1464_v12 = vpop.f32.mrf.mxu0 }
 0x318   :  { %1608 = vst [vmem:[%s2683_s7 + $0x58] sm:$0xff] %v1464_v12 }
 0x31c   :  { %v1180_v4 = vpop.f32.mrf.mxu3 }
 0x31d   :  { %v1297_v18 = vmax.f32 %v1180_v4, 0.0 }
 0x31e   :  { %v960_v34 = vpop.f32.mrf.mxu2 }
 0x31f   :  { %v1346_v46 = vpack.c.bf16 %v1297_v18, %v1296_v5  ;;  %v1026_v6 = vpack.c.bf16 %v960_v34, %v958_v45  ;;  %v1467_v13 = vpop.f32.mrf.mxu0 }
 0x320   :  { %1609 = vst [vmem:[%s2683_s7 + $0x60] sm:$0xff] %v1467_v13 }
 0x321   :  { %1222 = vmatmul.bf16.gmra.mxu3 %v1026_v6  ;;  %1506 = vmatmul.bf16.gmra.mxu0 %v1346_v46 }
 0x324   :  { %v1183_v30 = vpop.f32.mrf.mxu3 }
 0x325   :  { %v1298_v44 = vmax.f32 %v1183_v30, 0.0 }
 0x326   :  { %v963_v24 = vpop.f32.mrf.mxu2 }
 0x327   :  { %v1469_v14 = vpop.f32.mrf.mxu0 }
 0x328   :  { %1610 = vst [vmem:[%s2683_s7 + $0x68] sm:$0xff] %v1469_v14 }
 0x32c   :  { %v1185_v38 = vpop.f32.mrf.mxu3 }
 0x32d   :  { %v1299_v47 = vmax.f32 %v1185_v38, 0.0 }
 0x32e   :  { %v965_v49 = vpop.f32.mrf.mxu2 }
 0x32f   :  { %v1347_v50 = vpack.c.bf16 %v1299_v47, %v1298_v44  ;;  %v1027_v52 = vpack.c.bf16 %v965_v49, %v963_v24  ;;  %v1472_v22 = vpop.f32.mrf.mxu0 }
 0x330   :  { %1611 = vst [vmem:[%s2683_s7 + $0x70] sm:$0xff] %v1472_v22 }
 0x331   :  { %1227 = vmatmul.bf16.gmra.mxu3 %v1027_v52  ;;  %1511 = vmatmul.bf16.gmra.mxu0 %v1347_v50 }
 0x334   :  { %v1188_v23 = vpop.f32.mrf.mxu3 }
 0x335   :  { %v1300_v61 = vmax.f32 %v1188_v23, 0.0 }
 0x336   :  { %v968_v60 = vpop.f32.mrf.mxu2 }
 0x337   :  { %v1474_v26 = vpop.f32.mrf.mxu0 }
 0x338   :  { %1612 = vst [vmem:[%s2683_s7 + $0x78] sm:$0xff] %v1474_v26 }
 0x33c   :  { %v1190_v27 = vpop.f32.mrf.mxu3 }
 0x33d   :  { %v1301_v1 = vmax.f32 %v1190_v27, 0.0 }
 0x33e   :  { %v970_v48 = vpop.f32.mrf.mxu2 }
 0x33f   :  { %v1348_v7 = vpack.c.bf16 %v1301_v1, %v1300_v61  ;;  %v1028_v39 = vpack.c.bf16 %v970_v48, %v968_v60  ;;  %v1477_v41 = vpop.f32.mrf.mxu0 }
 0x340   :  { %1613 = vst [vmem:[%s2683_s7 + $0x80] sm:$0xff] %v1477_v41 }
 0x341   :  { %1232 = vmatmul.bf16.gmra.mxu3 %v1028_v39  ;;  %1516 = vmatmul.bf16.gmra.mxu0 %v1348_v7 }
 0x344   :  { %v1193_v43 = vpop.f32.mrf.mxu3 }
 0x345   :  { %v1302_v57 = vmax.f32 %v1193_v43, 0.0 }
 0x346   :  { %v973_v11 = vpop.f32.mrf.mxu2 }
 0x347   :  { %v1479_v15 = vpop.f32.mrf.mxu0 }
 0x348   :  { %1614 = vst [vmem:[%s2683_s7 + $0x88] sm:$0xff] %v1479_v15 }
 0x34c   :  { %v1195_v53 = vpop.f32.mrf.mxu3 }
 0x34d   :  { %v1303_v58 = vmax.f32 %v1195_v53, 0.0 }
 0x34e   :  { %v975_v40 = vpop.f32.mrf.mxu2 }
 0x34f   :  { %v1349_v28 = vpack.c.bf16 %v1303_v58, %v1302_v57  ;;  %v1029_v62 = vpack.c.bf16 %v975_v40, %v973_v11  ;;  %v1482_v42 = vpop.f32.mrf.mxu0 }
 0x350   :  { %1615 = vst [vmem:[%s2683_s7 + $0x90] sm:$0xff] %v1482_v42 }
 0x351   :  { %1237 = vmatmul.bf16.gmra.mxu3 %v1029_v62  ;;  %1521 = vmatmul.bf16.gmra.mxu0 %v1349_v28 }
 0x354   :  { %v1198_v59 = vpop.f32.mrf.mxu3 }
 0x355   :  { %v1304_v2 = vmax.f32 %v1198_v59, 0.0 }
 0x356   :  { %v978_v63 = vpop.f32.mrf.mxu2 }
 0x357   :  { %v1484_v16 = vpop.f32.mrf.mxu0 }
 0x358   :  { %1616 = vst [vmem:[%s2683_s7 + $0x98] sm:$0xff] %v1484_v16 }
 0x35c   :  { %v1200_v19 = vpop.f32.mrf.mxu3 }
 0x35d   :  { %v1305_v10 = vmax.f32 %v1200_v19, 0.0 }
 0x35e   :  { %v980_v20 = vpop.f32.mrf.mxu2 }
 0x35f   :  { %v1350_v21 = vpack.c.bf16 %v1305_v10, %v1304_v2  ;;  %v1030_v3 = vpack.c.bf16 %v980_v20, %v978_v63  ;;  %v1487_v25 = vpop.f32.mrf.mxu0 }
 0x360   :  { %1617 = vst [vmem:[%s2683_s7 + $0xa0] sm:$0xff] %v1487_v25 }
 0x361   :  { %1242 = vmatmul.bf16.gmra.mxu3 %v1030_v3  ;;  %1526 = vmatmul.bf16.gmra.mxu0 %v1350_v21 }
 0x364   :  { %v1203_v29 = vpop.f32.mrf.mxu3 }
 0x365   :  { %v1306_v17 = vmax.f32 %v1203_v29, 0.0 }
 0x366   :  { %v983_v32 = vpop.f32.mrf.mxu2 }
 0x367   :  { %v1489_v0 = vpop.f32.mrf.mxu0 }
 0x368   :  { %1618 = vst [vmem:[%s2683_s7 + $0xa8] sm:$0xff] %v1489_v0 }
 0x36c   :  { %v1205_v54 = vpop.f32.mrf.mxu3 }
 0x36d   :  { %v1307_v8 = vmax.f32 %v1205_v54, 0.0 }
 0x36e   :  { %v985_v37 = vpop.f32.mrf.mxu2 }
 0x36f   :  { %v1351_v31 = vpack.c.bf16 %v1307_v8, %v1306_v17  ;;  %v1031_v55 = vpack.c.bf16 %v985_v37, %v983_v32  ;;  %v1492_v56 = vpop.f32.mrf.mxu0 }
 0x370   :  { %1619 = vst [vmem:[%s2683_s7 + $0xb0] sm:$0xff] %v1492_v56 }
 0x371   :  { %1247 = vmatmul.bf16.gmra.mxu3 %v1031_v55  ;;  %1531 = vmatmul.bf16.gmra.mxu0 %v1351_v31 }
 0x374   :  { %v1208_v9 = vpop.f32.mrf.mxu3 }
 0x375   :  { %v1308_v35 = vmax.f32 %v1208_v9, 0.0 }
 0x376   :  { %v988_v36 = vpop.f32.mrf.mxu2 }
 0x377   :  { %v1494_v51 = vpop.f32.mrf.mxu0 }
 0x378   :  { %1620 = vst [vmem:[%s2683_s7 + $0xb8] sm:$0xff] %v1494_v51 }
 0x37c   :  { %v1210_v33 = vpop.f32.mrf.mxu3 }
 0x37d   :  { %v1309_v45 = vmax.f32 %v1210_v33, 0.0 }
 0x37e   :  { %v990_v12 = vpop.f32.mrf.mxu2 }
 0x37f   :  { %v1352_v4 = vpack.c.bf16 %v1309_v45, %v1308_v35  ;;  %v1032_v5 = vpack.c.bf16 %v990_v12, %v988_v36  ;;  %v1497_v18 = vpop.f32.mrf.mxu0 }
 0x380   :  { %1621 = vst [vmem:[%s2683_s7 + $0xc0] sm:$0xff] %v1497_v18 }
 0x381   :  { %1252 = vmatmul.bf16.gmra.mxu3 %v1032_v5  ;;  %1536 = vmatmul.bf16.gmra.mxu0 %v1352_v4 }
 0x384   :  { %v1213_v34 = vpop.f32.mrf.mxu3 }
 0x385   :  { %v1310_v30 = vmax.f32 %v1213_v34, 0.0 }
 0x386   :  { %v993_v46 = vpop.f32.mrf.mxu2 }
 0x387   :  { %v1499_v6 = vpop.f32.mrf.mxu0 }
 0x388   :  { %1622 = vst [vmem:[%s2683_s7 + $0xc8] sm:$0xff] %v1499_v6 }
 0x38c   :  { %v1215_v13 = vpop.f32.mrf.mxu3 }
 0x38d   :  { %v1311_v24 = vmax.f32 %v1215_v13, 0.0 }
 0x38e   :  { %v995_v14 = vpop.f32.mrf.mxu2 }
 0x38f   :  { %v1353_v38 = vpack.c.bf16 %v1311_v24, %v1310_v30  ;;  %v1033_v44 = vpack.c.bf16 %v995_v14, %v993_v46  ;;  %v1502_v47 = vpop.f32.mrf.mxu0 }
 0x390   :  { %1623 = vst [vmem:[%s2683_s7 + $0xd0] sm:$0xff] %v1502_v47 }
 0x391   :  { %1257 = vmatmul.bf16.gmra.mxu3 %v1033_v44  ;;  %1541 = vmatmul.bf16.gmra.mxu0 %v1353_v38 }
 0x394   :  { %v1218_v49 = vpop.f32.mrf.mxu3 }
 0x395   :  { %v1312_v23 = vmax.f32 %v1218_v49, 0.0 }
 0x396   :  { %v998_v50 = vpop.f32.mrf.mxu2 }
 0x397   :  { %v1504_v52 = vpop.f32.mrf.mxu0 }
 0x398   :  { %1624 = vst [vmem:[%s2683_s7 + $0xd8] sm:$0xff] %v1504_v52 }
 0x39c   :  { %v1220_v22 = vpop.f32.mrf.mxu3 }
 0x39d   :  { %v1313_v60 = vmax.f32 %v1220_v22, 0.0 }
 0x39e   :  { %v1000_v26 = vpop.f32.mrf.mxu2 }
 0x39f   :  { %v1354_v27 = vpack.c.bf16 %v1313_v60, %v1312_v23  ;;  %v1034_v61 = vpack.c.bf16 %v1000_v26, %v998_v50  ;;  %v1507_v1 = vpop.f32.mrf.mxu0 }
 0x3a0   :  { %1625 = vst [vmem:[%s2683_s7 + $0xe0] sm:$0xff] %v1507_v1 }
 0x3a1   :  { %1262 = vmatmul.bf16.gmra.mxu3 %v1034_v61  ;;  %1546 = vmatmul.bf16.gmra.mxu0 %v1354_v27 }
 0x3a4   :  { %v1223_v48 = vpop.f32.mrf.mxu3 }
 0x3a5   :  { %v1314_v41 = vmax.f32 %v1223_v48, 0.0 }
 0x3a7   :  { %v1509_v7 = vpop.f32.mrf.mxu0 }
 0x3a8   :  { %1626 = vst [vmem:[%s2683_s7 + $0xe8] sm:$0xff] %v1509_v7 }
 0x3ac   :  { %v1225_v39 = vpop.f32.mrf.mxu3 }
 0x3ad   :  { %v1315_v43 = vmax.f32 %v1225_v39, 0.0 }
 0x3af   :  { %v1355_v11 = vpack.c.bf16 %v1315_v43, %v1314_v41  ;;  %v1512_v15 = vpop.f32.mrf.mxu0 }
 0x3b0   :  { %1627 = vst [vmem:[%s2683_s7 + $0xf0] sm:$0xff] %v1512_v15 }
 0x3b1   :  { %1551 = vmatmul.bf16.gmra.mxu0 %v1355_v11 }
 0x3b4   :  { %v1228_v53 = vpop.f32.mrf.mxu3 }
 0x3b5   :  { %v1316_v40 = vmax.f32 %v1228_v53, 0.0 }
 0x3b7   :  { %v1514_v57 = vpop.f32.mrf.mxu0 }
 0x3b8   :  { %1628 = vst [vmem:[%s2683_s7 + $0xf8] sm:$0xff] %v1514_v57 }
 0x3bc   :  { %v1230_v58 = vpop.f32.mrf.mxu3 }
 0x3bd   :  { %v1317_v28 = vmax.f32 %v1230_v58, 0.0 }
 0x3bf   :  { %v1356_v62 = vpack.c.bf16 %v1317_v28, %v1316_v40  ;;  %v1517_v42 = vpop.f32.mrf.mxu0 }
 0x3c0   :  { %1629 = vst [vmem:[%s2683_s7 + $0x100] sm:$0xff] %v1517_v42 }
 0x3c1   :  { %1556 = vmatmul.bf16.gmra.mxu0 %v1356_v62 }
 0x3c4   :  { %v1233_v59 = vpop.f32.mrf.mxu3 }
 0x3c5   :  { %v1318_v19 = vmax.f32 %v1233_v59, 0.0 }
 0x3c7   :  { %v1519_v63 = vpop.f32.mrf.mxu0 }
 0x3c8   :  { %1630 = vst [vmem:[%s2683_s7 + $0x108] sm:$0xff] %v1519_v63 }
 0x3cc   :  { %v1235_v16 = vpop.f32.mrf.mxu3 }
 0x3cd   :  { %v1319_v2 = vmax.f32 %v1235_v16, 0.0 }
 0x3cf   :  { %v1357_v10 = vpack.c.bf16 %v1319_v2, %v1318_v19  ;;  %v1522_v20 = vpop.f32.mrf.mxu0 }
 0x3d0   :  { %1631 = vst [vmem:[%s2683_s7 + $0x110] sm:$0xff] %v1522_v20 }
 0x3d1   :  { %1561 = vmatmul.bf16.gmra.mxu0 %v1357_v10 }
 0x3d4   :  { %v1238_v21 = vpop.f32.mrf.mxu3 }
 0x3d5   :  { %v1320_v29 = vmax.f32 %v1238_v21, 0.0 }
 0x3d7   :  { %v1524_v3 = vpop.f32.mrf.mxu0 }
 0x3d8   :  { %1632 = vst [vmem:[%s2683_s7 + $0x118] sm:$0xff] %v1524_v3 }
 0x3dc   :  { %v1240_v25 = vpop.f32.mrf.mxu3 }
 0x3dd   :  { %v1321_v32 = vmax.f32 %v1240_v25, 0.0 }
 0x3df   :  { %v1358_v0 = vpack.c.bf16 %v1321_v32, %v1320_v29  ;;  %v1527_v54 = vpop.f32.mrf.mxu0 }
 0x3e0   :  { %1633 = vst [vmem:[%s2683_s7 + $0x120] sm:$0xff] %v1527_v54 }
 0x3e1   :  { %1566 = vmatmul.bf16.gmra.mxu0 %v1358_v0 }
 0x3e4   :  { %v1243_v17 = vpop.f32.mrf.mxu3 }
 0x3e5   :  { %v1322_v31 = vmax.f32 %v1243_v17, 0.0 }
 0x3e7   :  { %v1529_v8 = vpop.f32.mrf.mxu0 }
 0x3e8   :  { %1634 = vst [vmem:[%s2683_s7 + $0x128] sm:$0xff] %v1529_v8 }
 0x3ec   :  { %v1245_v37 = vpop.f32.mrf.mxu3 }
 0x3ed   :  { %v1323_v55 = vmax.f32 %v1245_v37, 0.0 }
 0x3ef   :  { %v1359_v56 = vpack.c.bf16 %v1323_v55, %v1322_v31  ;;  %v1532_v9 = vpop.f32.mrf.mxu0 }
 0x3f0   :  { %1635 = vst [vmem:[%s2683_s7 + $0x130] sm:$0xff] %v1532_v9 }
 0x3f1   :  { %1571 = vmatmul.bf16.gmra.mxu0 %v1359_v56 }
 0x3f4   :  { %v1248_v36 = vpop.f32.mrf.mxu3 }
 0x3f5   :  { %v1324_v35 = vmax.f32 %v1248_v36, 0.0 }
 0x3f7   :  { %v1534_v51 = vpop.f32.mrf.mxu0 }
 0x3f8   :  { %1636 = vst [vmem:[%s2683_s7 + $0x138] sm:$0xff] %v1534_v51 }
 0x3fc   :  { %v1250_v33 = vpop.f32.mrf.mxu3 }
 0x3fd   :  { %v1325_v45 = vmax.f32 %v1250_v33, 0.0 }
 0x3ff   :  { %v1360_v12 = vpack.c.bf16 %v1325_v45, %v1324_v35  ;;  %v1537_v4 = vpop.f32.mrf.mxu0 }
 0x400   :  { %1637 = vst [vmem:[%s2683_s7 + $0x140] sm:$0xff] %v1537_v4 }
 0x401   :  { %1576 = vmatmul.bf16.gmra.mxu0 %v1360_v12 }
 0x404   :  { %v1253_v5 = vpop.f32.mrf.mxu3 }
 0x405   :  { %v1326_v46 = vmax.f32 %v1253_v5, 0.0 }
 0x407   :  { %v1539_v18 = vpop.f32.mrf.mxu0 }
 0x408   :  { %1638 = vst [vmem:[%s2683_s7 + $0x148] sm:$0xff] %v1539_v18 }
 0x40c   :  { %v1255_v34 = vpop.f32.mrf.mxu3 }
 0x40d   :  { %v1327_v6 = vmax.f32 %v1255_v34, 0.0 }
 0x40f   :  { %v1361_v13 = vpack.c.bf16 %v1327_v6, %v1326_v46  ;;  %v1542_v30 = vpop.f32.mrf.mxu0 }
 0x410   :  { %1639 = vst [vmem:[%s2683_s7 + $0x150] sm:$0xff] %v1542_v30 }
 0x411   :  { %1581 = vmatmul.bf16.gmra.mxu0 %v1361_v13 }
 0x414   :  { %v1258_v24 = vpop.f32.mrf.mxu3 }
 0x415   :  { %v1328_v44 = vmax.f32 %v1258_v24, 0.0 }
 0x417   :  { %v1544_v14 = vpop.f32.mrf.mxu0 }
 0x418   :  { %1640 = vst [vmem:[%s2683_s7 + $0x158] sm:$0xff] %v1544_v14 }
 0x41c   :  { %v1260_v38 = vpop.f32.mrf.mxu3 }
 0x41d   :  { %v1329_v47 = vmax.f32 %v1260_v38, 0.0 }
 0x41f   :  { %v1362_v49 = vpack.c.bf16 %v1329_v47, %v1328_v44  ;;  %v1547_v50 = vpop.f32.mrf.mxu0 }
 0x420   :  { %1641 = vst [vmem:[%s2683_s7 + $0x160] sm:$0xff] %v1547_v50 }
 0x421   :  { %1586 = vmatmul.bf16.gmra.mxu0 %v1362_v49 }
 0x424   :  { %v1263_v52 = vpop.f32.mrf.mxu3 }
 0x425   :  { %v1330_v60 = vmax.f32 %v1263_v52, 0.0 }
 0x427   :  { %v1549_v22 = vpop.f32.mrf.mxu0 }
 0x428   :  { %1642 = vst [vmem:[%s2683_s7 + $0x168] sm:$0xff] %v1549_v22 }
 0x42c   :  { %v1265_v23 = vpop.f32.mrf.mxu3 }
 0x42d   :  { %v1331_v26 = vmax.f32 %v1265_v23, 0.0 }
 0x42f   :  { %v1363_v27 = vpack.c.bf16 %v1331_v26, %v1330_v60  ;;  %v1552_v61 = vpop.f32.mrf.mxu0 }
 0x430   :  { %1643 = vst [vmem:[%s2683_s7 + $0x170] sm:$0xff] %v1552_v61 }
 0x431   :  { %1591 = vmatmul.bf16.vlgmr.msra.gmra.mxu3 %v1363_v27 }
 0x437   :  { %v1554_v1 = vpop.f32.mrf.mxu0 }
 0x438   :  { %1644 = vst [vmem:[%s2683_s7 + $0x178] sm:$0xff] %v1554_v1 }
 0x43f   :  { %v1557_v48 = vpop.f32.mrf.mxu0 }
 0x440   :  { %1645 = vst [vmem:[%s2683_s7 + $0x180] sm:$0xff] %v1557_v48 }
 0x447   :  { %v1559_v7 = vpop.f32.mrf.mxu0 }
 0x448   :  { %1646 = vst [vmem:[%s2683_s7 + $0x188] sm:$0xff] %v1559_v7 }
 0x44f   :  { %v1562_v39 = vpop.f32.mrf.mxu0 }
 0x450   :  { %1647 = vst [vmem:[%s2683_s7 + $0x190] sm:$0xff] %v1562_v39 }
 0x457   :  { %v1564_v41 = vpop.f32.mrf.mxu0 }
 0x458   :  { %1648 = vst [vmem:[%s2683_s7 + $0x198] sm:$0xff] %v1564_v41 }
 0x45f   :  { %v1567_v43 = vpop.f32.mrf.mxu0 }
 0x460   :  { %1649 = vst [vmem:[%s2683_s7 + $0x1a0] sm:$0xff] %v1567_v43 }
 0x467   :  { %v1569_v11 = vpop.f32.mrf.mxu0 }
 0x468   :  { %1650 = vst [vmem:[%s2683_s7 + $0x1a8] sm:$0xff] %v1569_v11 }
 0x46f   :  { %v1572_v15 = vpop.f32.mrf.mxu0 }
 0x470   :  { %1651 = vst [vmem:[%s2683_s7 + $0x1b0] sm:$0xff] %v1572_v15 }
 0x477   :  { %v1574_v53 = vpop.f32.mrf.mxu0 }
 0x478   :  { %1652 = vst [vmem:[%s2683_s7 + $0x1b8] sm:$0xff] %v1574_v53 }
 0x47f   :  { %v1577_v57 = vpop.f32.mrf.mxu0 }
 0x480   :  { %1653 = vst [vmem:[%s2683_s7 + $0x1c0] sm:$0xff] %v1577_v57 }
 0x487   :  { %v1579_v58 = vpop.f32.mrf.mxu0 }
 0x488   :  { %1654 = vst [vmem:[%s2683_s7 + $0x1c8] sm:$0xff] %v1579_v58 }
 0x48f   :  { %v1582_v40 = vpop.f32.mrf.mxu0 }
 0x490   :  { %1655 = vst [vmem:[%s2683_s7 + $0x1d0] sm:$0xff] %v1582_v40 }
 0x497   :  { %v1584_v28 = vpop.f32.mrf.mxu0 }
 0x498   :  { %1656 = vst [vmem:[%s2683_s7 + $0x1d8] sm:$0xff] %v1584_v28 }
 0x49f   :  { %v1587_v62 = vpop.f32.mrf.mxu0 }
 0x4a0   :  { %1657 = vst [vmem:[%s2683_s7 + $0x1e0] sm:$0xff] %v1587_v62 }
 0x4a7   :  { %v1589_v42 = vpop.f32.mrf.mxu0 }
 0x4a8   :  { %1658 = vst [vmem:[%s2683_s7 + $0x1e8] sm:$0xff] %v1589_v42 }
 0x4b4   :  { %v1592_v59 = vpop.f32.mrf.mxu3 }
 0x4b5   :  { %1659 = vst [vmem:[%s2683_s7 + $0x1f0] sm:$0xff] %v1592_v59 }
 0x4bc   :  { %v1594_v63 = vpop.f32.mrf.mxu3 }
 0x4bd   :  { %1660 = vst [vmem:[%s2683_s7 + $0x1f8] sm:$0xff] %v1594_v63 }

</bundles_post_ra>
